<compile_context>
chip_gen: v7x
topology: tpu7x:2x2x1
jax: 0.10.0
libtpu: 0.0.40
codegen_flags: <defaults>
</compile_context>

<pallas_src>
import jax
import jax.numpy as jnp
from jax.experimental import pallas as pl
from jax.experimental.pallas import tpu as pltpu

NEG_INF = float(jnp.finfo(jnp.float32).min)

PARAM_ORDER = [
    "n1g", "n1b", "n2g", "n2b", "n3g", "n3b",
    "sa_wq", "sa_bq", "sa_wk", "sa_bk", "sa_wv", "sa_bv", "sa_wo", "sa_bo",
    "ca_wq", "ca_bq", "ca_wk", "ca_bk", "ca_wv", "ca_bv", "ca_wo", "ca_bo",
    "w1", "b1", "w2", "b2",
]
# Weight matrices go to the MXU in bf16; biases / layernorm params stay f32.
WEIGHT_KEYS = frozenset(
    ["sa_wq", "sa_wk", "sa_wv", "sa_wo",
     "ca_wq", "ca_wk", "ca_wv", "ca_wo", "w1", "w2"])


def make_decoder_block_kernel(n_heads, eps):
    cdt = jnp.bfloat16  # MXU operand dtype (accumulation is always f32)

    def layer_norm_t(x, g, b):
        # feature-major layout [D, N]; statistics over the feature axis (0).
        mu = jnp.mean(x, axis=0, keepdims=True)
        var = jnp.mean(jnp.square(x - mu), axis=0, keepdims=True)
        return (x - mu) * jax.lax.rsqrt(var + eps) * g + b

    def kernel(ylens_ref, xlens_ref, ys_ref, xs_ref,
               n1g, n1b, n2g, n2b, n3g, n3b,
               sa_wq, sa_bq, sa_wk, sa_bk, sa_wv, sa_bv, sa_wo, sa_bo,
               ca_wq, ca_bq, ca_wk, ca_bk, ca_wv, ca_bv, ca_wo, ca_bo,
               w1, b1, w2, b2,
               out_ref, yy_aw_ref, xy_aw_ref):
        _, d_model, L = ys_ref.shape      # feature-major: [1, D, L]
        T = xs_ref.shape[2]
        tq = out_ref.shape[1]             # query-tile length
        d_k = d_model // n_heads
        inv_scale = 1.0 / float(d_k) ** 0.5

        b = pl.program_id(0)              # batch element
        qi = pl.program_id(1)             # query tile
        q0 = qi * tq                      # global query offset of this tile

        ylen = ylens_ref[b]
        xlen = xlens_ref[b]

        # ---- masks built in-kernel from sequence lengths (scalar prefetch) ----
        # causal + target-length mask for self-attention, source-length mask for
        # cross-attention.  Removes the O(L^2 + L*T) mask DMA per batch row.
        q_pos = q0 + jax.lax.broadcasted_iota(jnp.int32, (tq, L), 0)
        k_pos = jax.lax.broadcasted_iota(jnp.int32, (tq, L), 1)
        yy_mask = (k_pos <= q_pos) & (k_pos < ylen)
        xk_pos = jax.lax.broadcasted_iota(jnp.int32, (tq, T), 1)
        xy_mask = xk_pos < xlen

        ys_full = ys_ref[0]               # [D, L]  f32 residual base (full seq)
        xs_mem = xs_ref[0]                # [D, T]  bf16 encoder memory
        if tq == L:
            resid = ys_full
        else:
            resid = ys_ref[0, :, pl.ds(pl.multiple_of(q0, tq), tq)]  # [D, tq]

        def mha_t(q_in_t, kv_in_t, mask, wq, bq, wk, bk, wv, bv, wo, bo, aw_ref):
            """Multi-head attention in feature-major layout.

            q_in_t: [D, Lq] f32; kv_in_t: [D, Lk]; mask: [Lq, Lk] bool.
            Returns the pre-residual sub-layer output, [D, Lq] f32.
            """
            Lq = q_in_t.shape[1]
            Lk = kv_in_t.shape[1]
            # Fused [D,D] x [D,Lx] projections (M = d_model fills the MXU), f32 acc.
            q_t = jnp.dot(wq[...], q_in_t.astype(cdt),
                          preferred_element_type=jnp.float32) + bq[...]
            k_t = jnp.dot(wk[...], kv_in_t.astype(cdt),
                          preferred_element_type=jnp.float32) + bk[...]
            v_t = jnp.dot(wv[...], kv_in_t.astype(cdt),
                          preferred_element_type=jnp.float32) + bv[...]
            q_t = q_t * inv_scale          # fold 1/sqrt(d_k) once into Q

            # Head split: free major-dim reshapes in feature-major layout; only
            # Q needs one minor-dim swap to feed the score contraction.
            q3 = jnp.swapaxes(q_t.astype(cdt).reshape(n_heads, d_k, Lq), 1, 2)
            k3 = k_t.astype(cdt).reshape(n_heads, d_k, Lk)       # [H, d_k, Lk]
            v3 = v_t.astype(cdt).reshape(n_heads, d_k, Lk)       # [H, d_k, Lk]

            # Head-batched score contraction on the MXU: [H, Lq, Lk].
            e = jnp.einsum("hqd,hdk->hqk", q3, k3,
                           preferred_element_type=jnp.float32)
            # Fully-masked rows become a uniform distribution (exp(0) after the
            # max-subtraction of NEG_INF), matching softmax-over-finfo.min in
            # the reference implementation.
            e = jnp.where(mask[None, :, :], e, NEG_INF)
            m = jnp.max(e, axis=-1, keepdims=True)
            p = jnp.exp(e - m)
            # exact reciprocal: aw is an externally visible module output
            inv_l = 1.0 / jnp.sum(p, axis=-1, keepdims=True)
            aw = p * inv_l
            aw_ref[0] = aw.astype(aw_ref.dtype)    # single bf16 store, all heads

            # Head-batched context: native output order [H, d_k, Lq], so the
            # head merge back to [D, Lq] is a free major-dim reshape.
            cv = jnp.einsum("hdk,hqk->hdq", v3, aw.astype(cdt),
                            preferred_element_type=jnp.float32)
            ctx = cv.reshape(d_model, Lq)
            return jnp.dot(wo[...], ctx.astype(cdt),
                           preferred_element_type=jnp.float32) + bo[...]

        # ---- self-attention sub-layer (pre-norm); K/V span the full sequence ----
        kv_norm = layer_norm_t(ys_full, n1g[...], n1b[...])          # [D, L]
        q_norm = kv_norm if tq == L else layer_norm_t(resid, n1g[...], n1b[...])
        out = mha_t(q_norm, kv_norm, yy_mask,
                    sa_wq, sa_bq, sa_wk, sa_bk, sa_wv, sa_bv, sa_wo, sa_bo,
                    yy_aw_ref) + resid                                # dropout == id

        # ---- source-target attention (K/V = raw encoder outputs) ----------------
        resid2 = out
        out = mha_t(layer_norm_t(out, n2g[...], n2b[...]), xs_mem, xy_mask,
                    ca_wq, ca_bq, ca_wk, ca_bk, ca_wv, ca_bv, ca_wo, ca_bo,
                    xy_aw_ref) + resid2

        # ---- position-wise feed-forward sub-layer (relu) ------------------------
        resid3 = out
        xn = layer_norm_t(out, n3g[...], n3b[...])
        h1 = jnp.maximum(
            jnp.dot(w1[...], xn.astype(cdt),
                    preferred_element_type=jnp.float32) + b1[...], 0.0)
        ff = jnp.dot(w2[...], h1.astype(cdt),
                     preferred_element_type=jnp.float32) + b2[...]
        final_t = ff + resid3                                          # [D, tq] f32

        # Single transpose back to the module's [L, D] layout (lane dim = d_model,
        # lane-dense for real model widths).
        out_ref[0] = final_t.T

    return kernel


def transformer_decoder_block(ys, ylens, xs, xlens, params, n_heads,
                              layer_norm_eps=1e-12):
    """Pre-norm transformer decoder block forward (inference; dropout == identity).

    Masks are the standard decoder masks, generated in-kernel from `ylens`
    (causal + target padding) and `xlens` (source padding) via scalar prefetch.
    Returns (out [B,L,D] f32, yy_aw [B,H,L,L] bf16, xy_aw [B,H,L,T] bf16).
    """
    B, L, D = ys.shape
    T = xs.shape[1]
    H = n_heads
    cdt = jnp.bfloat16

    # Query tile: full L for short sequences, else 128-wide tiles (pipeline
    # depth, bounded VMEM, megacore sharding).  Real workloads should pad L.
    tq = L if L <= 128 else 128
    assert L % tq == 0, "pad L to a multiple of 128 for tiled decoding"
    n_qt = L // tq

    # Wrapper-side layout plumbing: feature-major activations so head split /
    # merge inside the kernel are free major-dim reshapes (no XLU transposes).
    ys_t = jnp.swapaxes(ys, 1, 2).astype(jnp.float32)   # [B, D, L] residual base stays f32
    xs_t = jnp.swapaxes(xs, 1, 2).astype(cdt)           # [B, D, T] bf16 K/V memory

    # Weights pre-transposed to [out, in] (kernel computes W @ x_t); biases and
    # layernorm parameters become [dim, 1] f32 columns.
    param_list = []
    for k in PARAM_ORDER:
        v = params[k]
        if k in WEIGHT_KEYS:
            param_list.append(v.T.astype(cdt))
        else:
            param_list.append(v.reshape(-1, 1).astype(jnp.float32))

    def act_spec(shape):   # per-batch full-length block, resident across q tiles
        nd = len(shape)
        return pl.BlockSpec((1,) + shape, lambda b, qi, *_: (b,) + (0,) * nd)

    def par_spec(shape):   # grid-invariant parameter: single-buffered VMEM copy
        nd = len(shape)
        return pl.BlockSpec(shape, lambda b, qi, *_: (0,) * nd,
                            pipeline_mode=pl.Buffered(1))

    in_specs = [act_spec((D, L)), act_spec((D, T))]
    in_specs += [par_spec(tuple(p.shape)) for p in param_list]

    # Attention weights are the largest output stream (O(B*H*L*(L+T))); bf16
    # halves both their HBM writeback and their double-buffered VMEM blocks.
    # TODO(synk): pad L/T to multiples of 128 for lane-dense aw stores on real
    # workloads.
    out_shape = (jax.ShapeDtypeStruct((B, L, D), jnp.float32),
                 jax.ShapeDtypeStruct((B, H, L, L), jnp.bfloat16),
                 jax.ShapeDtypeStruct((B, H, L, T), jnp.bfloat16))
    out_specs = (pl.BlockSpec((1, tq, D), lambda b, qi, *_: (b, qi, 0)),
                 pl.BlockSpec((1, H, tq, L), lambda b, qi, *_: (b, 0, qi, 0)),
                 pl.BlockSpec((1, H, tq, T), lambda b, qi, *_: (b, 0, qi, 0)))

    kernel = make_decoder_block_kernel(n_heads, layer_norm_eps)

    return pl.pallas_call(
        kernel,
        out_shape=out_shape,
        grid_spec=pltpu.PrefetchScalarGridSpec(
            num_scalar_prefetch=2,          # ylens, xlens -> SMEM
            grid=(B, n_qt),
            in_specs=in_specs,
            out_specs=out_specs),
        compiler_params=pltpu.CompilerParams(
            # batch x query-tile: independent axes -> megacore can shard both
            dimension_semantics=("parallel", "parallel"),
            # leave headroom below v7x's 64 MiB physical VMEM per TensorCore
            vmem_limit_bytes=48 * 1024 * 1024),
    )(ylens.astype(jnp.int32), xlens.astype(jnp.int32), ys_t, xs_t, *param_list)


# ----------------------- parameter construction -----------------------------

def xavier_uniform(key, shape):
    fan_in, fan_out = shape
    a = (6.0 / (fan_in + fan_out)) ** 0.5
    return jax.random.uniform(key, shape, jnp.float32, -a, a)


def init_params(key, d_model, d_ff):
    ks = iter(jax.random.split(key, 32))
    p = {}
    for i in (1, 2, 3):
        p[f"n{i}g"] = 1.0 + 0.02 * jax.random.normal(next(ks), (1, d_model), jnp.float32)
        p[f"n{i}b"] = 0.02 * jax.random.normal(next(ks), (1, d_model), jnp.float32)
    for pre in ("sa", "ca"):
        for name in ("wq", "wk", "wv", "wo"):
            p[f"{pre}_{name}"] = xavier_uniform(next(ks), (d_model, d_model))
            p[f"{pre}_b{name[-1]}"] = 0.01 * jax.random.normal(
                next(ks), (1, d_model), jnp.float32)
    p["w1"] = xavier_uniform(next(ks), (d_model, d_ff))
    p["b1"] = 0.01 * jax.random.normal(next(ks), (1, d_ff), jnp.float32)
    p["w2"] = xavier_uniform(next(ks), (d_ff, d_model))
    p["b2"] = 0.01 * jax.random.normal(next(ks), (1, d_model), jnp.float32)
    return p


# --------------------------- pure-JAX f32 reference --------------------------

def reference_block(ys, yy_mask, xs, xy_mask, p, n_heads, eps=1e-12):
    D = ys.shape[-1]
    dk = D // n_heads
    scale = dk ** 0.5

    def ln(x, g, b):
        mu = x.mean(-1, keepdims=True)
        var = ((x - mu) ** 2).mean(-1, keepdims=True)
        return (x - mu) / jnp.sqrt(var + eps) * g + b

    def mha(q_in, kv_in, mask, wq, bq, wk, bk, wv, bv, wo, bo):
        B, Lq, _ = q_in.shape
        Lk = kv_in.shape[1]
        q = (q_in @ wq + bq).reshape(B, Lq, n_heads, dk).transpose(0, 2, 1, 3)
        k = (kv_in @ wk + bk).reshape(B, Lk, n_heads, dk).transpose(0, 2, 1, 3)
        v = (kv_in @ wv + bv).reshape(B, Lk, n_heads, dk).transpose(0, 2, 1, 3)
        e = jnp.einsum("bhqd,bhkd->bhqk", q, k) / scale
        e = jnp.where(mask[:, None] > 0, e, NEG_INF)
        aw = jax.nn.softmax(e, axis=-1)
        cv = jnp.einsum("bhqk,bhkd->bhqd", aw, v).transpose(0, 2, 1, 3).reshape(B, Lq, D)
        return cv @ wo + bo, aw

    residual = ys
    ys_n = ln(ys, p["n1g"], p["n1b"])
    out, yy_aw = mha(ys_n, ys_n, yy_mask,
                     p["sa_wq"], p["sa_bq"], p["sa_wk"], p["sa_bk"],
                     p["sa_wv"], p["sa_bv"], p["sa_wo"], p["sa_bo"])
    out = out + residual
    residual = out
    out, xy_aw = mha(ln(out, p["n2g"], p["n2b"]), xs, xy_mask,
                     p["ca_wq"], p["ca_bq"], p["ca_wk"], p["ca_bk"],
                     p["ca_wv"], p["ca_bv"], p["ca_wo"], p["ca_bo"])
    out = out + residual
    residual = out
    out_n = ln(out, p["n3g"], p["n3b"])
    ff = jnp.maximum(out_n @ p["w1"] + p["b1"], 0.0) @ p["w2"] + p["b2"]
    return ff + residual, yy_aw, xy_aw


# --------------------------------- main --------------------------------------

if __name__ == "__main__":
    B, L, T = 2, 8, 16
    d_model, d_ff, n_heads = 32, 64, 4

    key = jax.random.PRNGKey(0)
    k_ys, k_xs, k_par = jax.random.split(key, 3)

    ys = jax.random.normal(k_ys, (B, L, d_model), jnp.float32)
    xs = jax.random.normal(k_xs, (B, T, d_model), jnp.float32)

    ylens = jnp.array([L, L], jnp.int32)        # full-length targets
    xlens = jnp.array([T, T - 5], jnp.int32)    # encoder output lengths

    params = init_params(k_par, d_model, d_ff)

    out, yy_aw, xy_aw = transformer_decoder_block(
        ys, ylens, xs, xlens, params, n_heads)
    jax.block_until_ready(out)

    # explicit masks (causal + padding) equivalent to the in-kernel generation
    q_ids = jnp.arange(L)[None, :, None]
    k_ids = jnp.arange(L)[None, None, :]
    yy_mask = ((k_ids <= q_ids) & (k_ids < ylens[:, None, None])).astype(jnp.float32)
    xy_mask = (jnp.arange(T)[None, None, :] < xlens[:, None, None]).astype(jnp.float32)
    xy_mask = jnp.broadcast_to(xy_mask, (B, L, T))

    ref_out, ref_yy, ref_xy = reference_block(ys, yy_mask, xs, xy_mask, params, n_heads)
    # bf16 matmul operands (f32 accumulation) and bf16 aw outputs vs. f32 reference
    assert jnp.allclose(out, ref_out, atol=5e-2, rtol=5e-2)
    assert jnp.allclose(yy_aw.astype(jnp.float32), ref_yy, atol=5e-2, rtol=5e-2)
    assert jnp.allclose(xy_aw.astype(jnp.float32), ref_xy, atol=5e-2, rtol=5e-2)

    print("KERNEL_OK")
</pallas_src>

<mosaic_0001>
module attributes {stable_mosaic.version = 11 : i64} {
  func.func @kernel(%arg0: i32, %arg1: i32, %arg2: memref<2xi32, #tpu.memory_space<smem>>, %arg3: memref<2xi32, #tpu.memory_space<smem>>, %arg4: memref<1x32x8xf32, #tpu.memory_space<vmem>>, %arg5: memref<1x32x16xbf16, #tpu.memory_space<vmem>>, %arg6: memref<32x1xf32, #tpu.memory_space<vmem>>, %arg7: memref<32x1xf32, #tpu.memory_space<vmem>>, %arg8: memref<32x1xf32, #tpu.memory_space<vmem>>, %arg9: memref<32x1xf32, #tpu.memory_space<vmem>>, %arg10: memref<32x1xf32, #tpu.memory_space<vmem>>, %arg11: memref<32x1xf32, #tpu.memory_space<vmem>>, %arg12: memref<32x32xbf16, #tpu.memory_space<vmem>>, %arg13: memref<32x1xf32, #tpu.memory_space<vmem>>, %arg14: memref<32x32xbf16, #tpu.memory_space<vmem>>, %arg15: memref<32x1xf32, #tpu.memory_space<vmem>>, %arg16: memref<32x32xbf16, #tpu.memory_space<vmem>>, %arg17: memref<32x1xf32, #tpu.memory_space<vmem>>, %arg18: memref<32x32xbf16, #tpu.memory_space<vmem>>, %arg19: memref<32x1xf32, #tpu.memory_space<vmem>>, %arg20: memref<32x32xbf16, #tpu.memory_space<vmem>>, %arg21: memref<32x1xf32, #tpu.memory_space<vmem>>, %arg22: memref<32x32xbf16, #tpu.memory_space<vmem>>, %arg23: memref<32x1xf32, #tpu.memory_space<vmem>>, %arg24: memref<32x32xbf16, #tpu.memory_space<vmem>>, %arg25: memref<32x1xf32, #tpu.memory_space<vmem>>, %arg26: memref<32x32xbf16, #tpu.memory_space<vmem>>, %arg27: memref<32x1xf32, #tpu.memory_space<vmem>>, %arg28: memref<64x32xbf16, #tpu.memory_space<vmem>>, %arg29: memref<64x1xf32, #tpu.memory_space<vmem>>, %arg30: memref<32x64xbf16, #tpu.memory_space<vmem>>, %arg31: memref<32x1xf32, #tpu.memory_space<vmem>>, %arg32: memref<1x8x32xf32, #tpu.memory_space<vmem>>, %arg33: memref<1x4x8x8xbf16, #tpu.memory_space<vmem>>, %arg34: memref<1x4x8x16xbf16, #tpu.memory_space<vmem>>) attributes {dimension_semantics = [#tpu.dimension_semantics<parallel>, #tpu.dimension_semantics<parallel>], iteration_bounds = array<i64: 2, 1>, scalar_prefetch = 2 : i64, scratch_operands = 0 : i64, tpu.core_type = #tpu.core_type<tc>, window_params = [{transform_indices = @transform_0, window_bounds = array<i64: 1, 32, 8>}, {transform_indices = @transform_1, window_bounds = array<i64: 1, 32, 16>}, {pipeline_mode = #tpu.pipeline_mode<synchronous>, transform_indices = @transform_2, window_bounds = array<i64: 32, 1>}, {pipeline_mode = #tpu.pipeline_mode<synchronous>, transform_indices = @transform_3, window_bounds = array<i64: 32, 1>}, {pipeline_mode = #tpu.pipeline_mode<synchronous>, transform_indices = @transform_4, window_bounds = array<i64: 32, 1>}, {pipeline_mode = #tpu.pipeline_mode<synchronous>, transform_indices = @transform_5, window_bounds = array<i64: 32, 1>}, {pipeline_mode = #tpu.pipeline_mode<synchronous>, transform_indices = @transform_6, window_bounds = array<i64: 32, 1>}, {pipeline_mode = #tpu.pipeline_mode<synchronous>, transform_indices = @transform_7, window_bounds = array<i64: 32, 1>}, {pipeline_mode = #tpu.pipeline_mode<synchronous>, transform_indices = @transform_8, window_bounds = array<i64: 32, 32>}, {pipeline_mode = #tpu.pipeline_mode<synchronous>, transform_indices = @transform_9, window_bounds = array<i64: 32, 1>}, {pipeline_mode = #tpu.pipeline_mode<synchronous>, transform_indices = @transform_10, window_bounds = array<i64: 32, 32>}, {pipeline_mode = #tpu.pipeline_mode<synchronous>, transform_indices = @transform_11, window_bounds = array<i64: 32, 1>}, {pipeline_mode = #tpu.pipeline_mode<synchronous>, transform_indices = @transform_12, window_bounds = array<i64: 32, 32>}, {pipeline_mode = #tpu.pipeline_mode<synchronous>, transform_indices = @transform_13, window_bounds = array<i64: 32, 1>}, {pipeline_mode = #tpu.pipeline_mode<synchronous>, transform_indices = @transform_14, window_bounds = array<i64: 32, 32>}, {pipeline_mode = #tpu.pipeline_mode<synchronous>, transform_indices = @transform_15, window_bounds = array<i64: 32, 1>}, {pipeline_mode = #tpu.pipeline_mode<synchronous>, transform_indices = @transform_16, window_bounds = array<i64: 32, 32>}, {pipeline_mode = #tpu.pipeline_mode<synchronous>, transform_indices = @transform_17, window_bounds = array<i64: 32, 1>}, {pipeline_mode = #tpu.pipeline_mode<synchronous>, transform_indices = @transform_18, window_bounds = array<i64: 32, 32>}, {pipeline_mode = #tpu.pipeline_mode<synchronous>, transform_indices = @transform_19, window_bounds = array<i64: 32, 1>}, {pipeline_mode = #tpu.pipeline_mode<synchronous>, transform_indices = @transform_20, window_bounds = array<i64: 32, 32>}, {pipeline_mode = #tpu.pipeline_mode<synchronous>, transform_indices = @transform_21, window_bounds = array<i64: 32, 1>}, {pipeline_mode = #tpu.pipeline_mode<synchronous>, transform_indices = @transform_22, window_bounds = array<i64: 32, 32>}, {pipeline_mode = #tpu.pipeline_mode<synchronous>, transform_indices = @transform_23, window_bounds = array<i64: 32, 1>}, {pipeline_mode = #tpu.pipeline_mode<synchronous>, transform_indices = @transform_24, window_bounds = array<i64: 64, 32>}, {pipeline_mode = #tpu.pipeline_mode<synchronous>, transform_indices = @transform_25, window_bounds = array<i64: 64, 1>}, {pipeline_mode = #tpu.pipeline_mode<synchronous>, transform_indices = @transform_26, window_bounds = array<i64: 32, 64>}, {pipeline_mode = #tpu.pipeline_mode<synchronous>, transform_indices = @transform_27, window_bounds = array<i64: 32, 1>}, {transform_indices = @transform_28, window_bounds = array<i64: 1, 8, 32>}, {transform_indices = @transform_29, window_bounds = array<i64: 1, 4, 8, 8>}, {transform_indices = @transform_30, window_bounds = array<i64: 1, 4, 8, 16>}]} {
    %c8_i32 = arith.constant 8 : i32
    %0 = arith.muli %arg1, %c8_i32 : i32
    %1 = arith.index_cast %arg0 : i32 to index
    %2 = memref.load %arg2[%1] : memref<2xi32, #tpu.memory_space<smem>>
    %3 = arith.index_cast %arg0 : i32 to index
    %4 = memref.load %arg3[%3] : memref<2xi32, #tpu.memory_space<smem>>
    %5 = tpu.iota {dimensions = array<i32: 0>} : vector<8x8xi32>
    %6 = vector.broadcast %0 : i32 to vector<8x8xi32>
    %7 = arith.addi %6, %5 : vector<8x8xi32>
    %8 = tpu.iota {dimensions = array<i32: 1>} : vector<8x8xi32>
    %9 = arith.cmpi sle, %8, %7 : vector<8x8xi32>
    %10 = vector.broadcast %2 : i32 to vector<8x8xi32>
    %11 = arith.cmpi slt, %8, %10 : vector<8x8xi32>
    %12 = arith.andi %9, %11 : vector<8x8xi1>
    %13 = tpu.iota {dimensions = array<i32: 1>} : vector<8x16xi32>
    %14 = vector.broadcast %4 : i32 to vector<8x16xi32>
    %15 = arith.cmpi slt, %13, %14 : vector<8x16xi32>
    %c0 = arith.constant 0 : index
    %c0_0 = arith.constant 0 : index
    %c0_1 = arith.constant 0 : index
    %16 = vector.load %arg4[%c0, %c0_0, %c0_1] : memref<1x32x8xf32, #tpu.memory_space<vmem>>, vector<1x32x8xf32>
    %17 = vector.shape_cast %16 : vector<1x32x8xf32> to vector<32x8xf32>
    %c0_2 = arith.constant 0 : index
    %c0_3 = arith.constant 0 : index
    %c0_4 = arith.constant 0 : index
    %18 = vector.load %arg5[%c0_2, %c0_3, %c0_4] : memref<1x32x16xbf16, #tpu.memory_space<vmem>>, vector<1x32x16xbf16>
    %19 = vector.shape_cast %18 : vector<1x32x16xbf16> to vector<32x16xbf16>
    %c0_5 = arith.constant 0 : index
    %c0_6 = arith.constant 0 : index
    %20 = vector.load %arg6[%c0_5, %c0_6] : memref<32x1xf32, #tpu.memory_space<vmem>>, vector<32x1xf32>
    %c0_7 = arith.constant 0 : index
    %c0_8 = arith.constant 0 : index
    %21 = vector.load %arg7[%c0_7, %c0_8] : memref<32x1xf32, #tpu.memory_space<vmem>>, vector<32x1xf32>
    %cst = arith.constant dense<0.000000e+00> : vector<8xf32>
    %22 = vector.multi_reduction <add>, %17, %cst [0] : vector<32x8xf32> to vector<8xf32>
    %23 = vector.shape_cast %22 : vector<8xf32> to vector<1x8xf32>
    %cst_9 = arith.constant 3.200000e+01 : f32
    %24 = vector.broadcast %cst_9 : f32 to vector<1x8xf32>
    %25 = arith.divf %23, %24 : vector<1x8xf32>
    %26 = vector.broadcast %25 : vector<1x8xf32> to vector<32x8xf32>
    %27 = arith.subf %17, %26 : vector<32x8xf32>
    %28 = arith.mulf %27, %27 : vector<32x8xf32>
    %cst_10 = arith.constant dense<0.000000e+00> : vector<8xf32>
    %29 = vector.multi_reduction <add>, %28, %cst_10 [0] : vector<32x8xf32> to vector<8xf32>
    %30 = vector.shape_cast %29 : vector<8xf32> to vector<1x8xf32>
    %cst_11 = arith.constant 3.200000e+01 : f32
    %31 = vector.broadcast %cst_11 : f32 to vector<1x8xf32>
    %32 = arith.divf %30, %31 : vector<1x8xf32>
    %33 = vector.broadcast %25 : vector<1x8xf32> to vector<32x8xf32>
    %34 = arith.subf %17, %33 : vector<32x8xf32>
    %cst_12 = arith.constant 9.99999996E-13 : f32
    %35 = vector.broadcast %cst_12 : f32 to vector<1x8xf32>
    %36 = arith.addf %32, %35 : vector<1x8xf32>
    %37 = math.rsqrt %36 : vector<1x8xf32>
    %38 = vector.broadcast %37 : vector<1x8xf32> to vector<32x8xf32>
    %39 = arith.mulf %34, %38 : vector<32x8xf32>
    %40 = vector.broadcast %20 : vector<32x1xf32> to vector<32x8xf32>
    %41 = arith.mulf %39, %40 : vector<32x8xf32>
    %42 = vector.broadcast %21 : vector<32x1xf32> to vector<32x8xf32>
    %43 = arith.addf %41, %42 : vector<32x8xf32>
    %c0_13 = arith.constant 0 : index
    %c0_14 = arith.constant 0 : index
    %44 = vector.load %arg12[%c0_13, %c0_14] : memref<32x32xbf16, #tpu.memory_space<vmem>>, vector<32x32xbf16>
    %45 = arith.truncf %43 : vector<32x8xf32> to vector<32x8xbf16>
    %cst_15 = arith.constant dense<0.000000e+00> : vector<32x8xf32>
    %46 = tpu.matmul %44, %45, %cst_15 {dimension_numbers = #tpu.dot_dimension_numbers<[1], [0], [0], [1], [0, 0, 1, 1], [], []>} : vector<32x32xbf16>, vector<32x8xbf16>, vector<32x8xf32> -> vector<32x8xf32>
    %c0_16 = arith.constant 0 : index
    %c0_17 = arith.constant 0 : index
    %47 = vector.load %arg13[%c0_16, %c0_17] : memref<32x1xf32, #tpu.memory_space<vmem>>, vector<32x1xf32>
    %48 = vector.broadcast %47 : vector<32x1xf32> to vector<32x8xf32>
    %49 = arith.addf %46, %48 : vector<32x8xf32>
    %c0_18 = arith.constant 0 : index
    %c0_19 = arith.constant 0 : index
    %50 = vector.load %arg14[%c0_18, %c0_19] : memref<32x32xbf16, #tpu.memory_space<vmem>>, vector<32x32xbf16>
    %51 = arith.truncf %43 : vector<32x8xf32> to vector<32x8xbf16>
    %cst_20 = arith.constant dense<0.000000e+00> : vector<32x8xf32>
    %52 = tpu.matmul %50, %51, %cst_20 {dimension_numbers = #tpu.dot_dimension_numbers<[1], [0], [0], [1], [0, 0, 1, 1], [], []>} : vector<32x32xbf16>, vector<32x8xbf16>, vector<32x8xf32> -> vector<32x8xf32>
    %c0_21 = arith.constant 0 : index
    %c0_22 = arith.constant 0 : index
    %53 = vector.load %arg15[%c0_21, %c0_22] : memref<32x1xf32, #tpu.memory_space<vmem>>, vector<32x1xf32>
    %54 = vector.broadcast %53 : vector<32x1xf32> to vector<32x8xf32>
    %55 = arith.addf %52, %54 : vector<32x8xf32>
    %c0_23 = arith.constant 0 : index
    %c0_24 = arith.constant 0 : index
    %56 = vector.load %arg16[%c0_23, %c0_24] : memref<32x32xbf16, #tpu.memory_space<vmem>>, vector<32x32xbf16>
    %57 = arith.truncf %43 : vector<32x8xf32> to vector<32x8xbf16>
    %cst_25 = arith.constant dense<0.000000e+00> : vector<32x8xf32>
    %58 = tpu.matmul %56, %57, %cst_25 {dimension_numbers = #tpu.dot_dimension_numbers<[1], [0], [0], [1], [0, 0, 1, 1], [], []>} : vector<32x32xbf16>, vector<32x8xbf16>, vector<32x8xf32> -> vector<32x8xf32>
    %c0_26 = arith.constant 0 : index
    %c0_27 = arith.constant 0 : index
    %59 = vector.load %arg17[%c0_26, %c0_27] : memref<32x1xf32, #tpu.memory_space<vmem>>, vector<32x1xf32>
    %60 = vector.broadcast %59 : vector<32x1xf32> to vector<32x8xf32>
    %61 = arith.addf %58, %60 : vector<32x8xf32>
    %cst_28 = arith.constant 0.353553385 : f32
    %62 = vector.broadcast %cst_28 : f32 to vector<32x8xf32>
    %63 = arith.mulf %49, %62 : vector<32x8xf32>
    %64 = arith.truncf %63 : vector<32x8xf32> to vector<32x8xbf16>
    %65 = vector.shape_cast %64 : vector<32x8xbf16> to vector<4x8x8xbf16>
    %66 = tpu.transpose %65, [0, 2, 1] : vector<4x8x8xbf16> -> vector<4x8x8xbf16>
    %67 = arith.truncf %55 : vector<32x8xf32> to vector<32x8xbf16>
    %68 = vector.shape_cast %67 : vector<32x8xbf16> to vector<4x8x8xbf16>
    %69 = arith.truncf %61 : vector<32x8xf32> to vector<32x8xbf16>
    %70 = vector.shape_cast %69 : vector<32x8xbf16> to vector<4x8x8xbf16>
    "tpu.trace_start"() <{level = 10 : i32, message = "hqd,hdk->hqk"}> : () -> ()
    %cst_29 = arith.constant dense<0.000000e+00> : vector<4x8x8xf32>
    %71 = tpu.matmul %66, %68, %cst_29 {dimension_numbers = #tpu.dot_dimension_numbers<[2], [1], [1], [2], [0, 0, 0, 1, 1, 2], [0], [0]>} : vector<4x8x8xbf16>, vector<4x8x8xbf16>, vector<4x8x8xf32> -> vector<4x8x8xf32>
    "tpu.trace_stop"() : () -> ()
    %72 = vector.shape_cast %12 : vector<8x8xi1> to vector<1x8x8xi1>
    %cst_30 = arith.constant -3.40282347E+38 : f32
    %73 = vector.shape_cast %72 : vector<1x8x8xi1> to vector<1x8x8xi1>
    %74 = vector.broadcast %73 : vector<1x8x8xi1> to vector<4x8x8xi1>
    %75 = vector.broadcast %cst_30 : f32 to vector<4x8x8xf32>
    %76 = arith.select %74, %71, %75 : vector<4x8x8xi1>, vector<4x8x8xf32>
    %cst_31 = arith.constant dense<0xFF800000> : vector<4x8xf32>
    %77 = vector.multi_reduction <maximumf>, %76, %cst_31 [2] : vector<4x8x8xf32> to vector<4x8xf32>
    %78 = vector.shape_cast %77 : vector<4x8xf32> to vector<4x8x1xf32>
    %79 = vector.broadcast %78 : vector<4x8x1xf32> to vector<4x8x8xf32>
    %80 = arith.subf %76, %79 : vector<4x8x8xf32>
    %81 = math.exp %80 : vector<4x8x8xf32>
    %cst_32 = arith.constant dense<0.000000e+00> : vector<4x8xf32>
    %82 = vector.multi_reduction <add>, %81, %cst_32 [2] : vector<4x8x8xf32> to vector<4x8xf32>
    %83 = vector.shape_cast %82 : vector<4x8xf32> to vector<4x8x1xf32>
    %cst_33 = arith.constant 1.000000e+00 : f32
    %84 = vector.broadcast %cst_33 : f32 to vector<4x8x1xf32>
    %85 = arith.divf %84, %83 : vector<4x8x1xf32>
    %86 = vector.broadcast %85 : vector<4x8x1xf32> to vector<4x8x8xf32>
    %87 = arith.mulf %81, %86 : vector<4x8x8xf32>
    %88 = arith.truncf %87 : vector<4x8x8xf32> to vector<4x8x8xbf16>
    %c0_34 = arith.constant 0 : index
    %c0_35 = arith.constant 0 : index
    %c0_36 = arith.constant 0 : index
    %c0_37 = arith.constant 0 : index
    %89 = vector.load %arg33[%c0_34, %c0_35, %c0_36, %c0_37] : memref<1x4x8x8xbf16, #tpu.memory_space<vmem>>, vector<1x4x8x8xbf16>
    %90 = vector.shape_cast %89 : vector<1x4x8x8xbf16> to vector<4x8x8xbf16>
    %91 = vector.shape_cast %88 : vector<4x8x8xbf16> to vector<1x4x8x8xbf16>
    tpu.vector_store %arg33[%c0_34, %c0_35, %c0_36, %c0_37], %91 {strides = array<i32>} : memref<1x4x8x8xbf16, #tpu.memory_space<vmem>>, vector<1x4x8x8xbf16>,
    %92 = arith.truncf %87 : vector<4x8x8xf32> to vector<4x8x8xbf16>
    "tpu.trace_start"() <{level = 10 : i32, message = "hdk,hqk->hdq"}> : () -> ()
    %cst_38 = arith.constant dense<0.000000e+00> : vector<4x8x8xf32>
    %93 = tpu.matmul %70, %92, %cst_38 {dimension_numbers = #tpu.dot_dimension_numbers<[2], [2], [1], [1], [0, 0, 0, 1, 1, 1], [0], [0]>} : vector<4x8x8xbf16>, vector<4x8x8xbf16>, vector<4x8x8xf32> -> vector<4x8x8xf32>
    "tpu.trace_stop"() : () -> ()
    %94 = vector.shape_cast %93 : vector<4x8x8xf32> to vector<32x8xf32>
    %c0_39 = arith.constant 0 : index
    %c0_40 = arith.constant 0 : index
    %95 = vector.load %arg18[%c0_39, %c0_40] : memref<32x32xbf16, #tpu.memory_space<vmem>>, vector<32x32xbf16>
    %96 = arith.truncf %94 : vector<32x8xf32> to vector<32x8xbf16>
    %cst_41 = arith.constant dense<0.000000e+00> : vector<32x8xf32>
    %97 = tpu.matmul %95, %96, %cst_41 {dimension_numbers = #tpu.dot_dimension_numbers<[1], [0], [0], [1], [0, 0, 1, 1], [], []>} : vector<32x32xbf16>, vector<32x8xbf16>, vector<32x8xf32> -> vector<32x8xf32>
    %c0_42 = arith.constant 0 : index
    %c0_43 = arith.constant 0 : index
    %98 = vector.load %arg19[%c0_42, %c0_43] : memref<32x1xf32, #tpu.memory_space<vmem>>, vector<32x1xf32>
    %99 = vector.broadcast %98 : vector<32x1xf32> to vector<32x8xf32>
    %100 = arith.addf %97, %99 : vector<32x8xf32>
    %101 = arith.addf %100, %17 : vector<32x8xf32>
    %c0_44 = arith.constant 0 : index
    %c0_45 = arith.constant 0 : index
    %102 = vector.load %arg8[%c0_44, %c0_45] : memref<32x1xf32, #tpu.memory_space<vmem>>, vector<32x1xf32>
    %c0_46 = arith.constant 0 : index
    %c0_47 = arith.constant 0 : index
    %103 = vector.load %arg9[%c0_46, %c0_47] : memref<32x1xf32, #tpu.memory_space<vmem>>, vector<32x1xf32>
    %cst_48 = arith.constant dense<0.000000e+00> : vector<8xf32>
    %104 = vector.multi_reduction <add>, %101, %cst_48 [0] : vector<32x8xf32> to vector<8xf32>
    %105 = vector.shape_cast %104 : vector<8xf32> to vector<1x8xf32>
    %cst_49 = arith.constant 3.200000e+01 : f32
    %106 = vector.broadcast %cst_49 : f32 to vector<1x8xf32>
    %107 = arith.divf %105, %106 : vector<1x8xf32>
    %108 = vector.broadcast %107 : vector<1x8xf32> to vector<32x8xf32>
    %109 = arith.subf %101, %108 : vector<32x8xf32>
    %110 = arith.mulf %109, %109 : vector<32x8xf32>
    %cst_50 = arith.constant dense<0.000000e+00> : vector<8xf32>
    %111 = vector.multi_reduction <add>, %110, %cst_50 [0] : vector<32x8xf32> to vector<8xf32>
    %112 = vector.shape_cast %111 : vector<8xf32> to vector<1x8xf32>
    %cst_51 = arith.constant 3.200000e+01 : f32
    %113 = vector.broadcast %cst_51 : f32 to vector<1x8xf32>
    %114 = arith.divf %112, %113 : vector<1x8xf32>
    %115 = vector.broadcast %107 : vector<1x8xf32> to vector<32x8xf32>
    %116 = arith.subf %101, %115 : vector<32x8xf32>
    %cst_52 = arith.constant 9.99999996E-13 : f32
    %117 = vector.broadcast %cst_52 : f32 to vector<1x8xf32>
    %118 = arith.addf %114, %117 : vector<1x8xf32>
    %119 = math.rsqrt %118 : vector<1x8xf32>
    %120 = vector.broadcast %119 : vector<1x8xf32> to vector<32x8xf32>
    %121 = arith.mulf %116, %120 : vector<32x8xf32>
    %122 = vector.broadcast %102 : vector<32x1xf32> to vector<32x8xf32>
    %123 = arith.mulf %121, %122 : vector<32x8xf32>
    %124 = vector.broadcast %103 : vector<32x1xf32> to vector<32x8xf32>
    %125 = arith.addf %123, %124 : vector<32x8xf32>
    %c0_53 = arith.constant 0 : index
    %c0_54 = arith.constant 0 : index
    %126 = vector.load %arg20[%c0_53, %c0_54] : memref<32x32xbf16, #tpu.memory_space<vmem>>, vector<32x32xbf16>
    %127 = arith.truncf %125 : vector<32x8xf32> to vector<32x8xbf16>
    %cst_55 = arith.constant dense<0.000000e+00> : vector<32x8xf32>
    %128 = tpu.matmul %126, %127, %cst_55 {dimension_numbers = #tpu.dot_dimension_numbers<[1], [0], [0], [1], [0, 0, 1, 1], [], []>} : vector<32x32xbf16>, vector<32x8xbf16>, vector<32x8xf32> -> vector<32x8xf32>
    %c0_56 = arith.constant 0 : index
    %c0_57 = arith.constant 0 : index
    %129 = vector.load %arg21[%c0_56, %c0_57] : memref<32x1xf32, #tpu.memory_space<vmem>>, vector<32x1xf32>
    %130 = vector.broadcast %129 : vector<32x1xf32> to vector<32x8xf32>
    %131 = arith.addf %128, %130 : vector<32x8xf32>
    %c0_58 = arith.constant 0 : index
    %c0_59 = arith.constant 0 : index
    %132 = vector.load %arg22[%c0_58, %c0_59] : memref<32x32xbf16, #tpu.memory_space<vmem>>, vector<32x32xbf16>
    %cst_60 = arith.constant dense<0.000000e+00> : vector<32x16xf32>
    %133 = tpu.matmul %132, %19, %cst_60 {dimension_numbers = #tpu.dot_dimension_numbers<[1], [0], [0], [1], [0, 0, 1, 1], [], []>} : vector<32x32xbf16>, vector<32x16xbf16>, vector<32x16xf32> -> vector<32x16xf32>
    %c0_61 = arith.constant 0 : index
    %c0_62 = arith.constant 0 : index
    %134 = vector.load %arg23[%c0_61, %c0_62] : memref<32x1xf32, #tpu.memory_space<vmem>>, vector<32x1xf32>
    %135 = vector.broadcast %134 : vector<32x1xf32> to vector<32x16xf32>
    %136 = arith.addf %133, %135 : vector<32x16xf32>
    %c0_63 = arith.constant 0 : index
    %c0_64 = arith.constant 0 : index
    %137 = vector.load %arg24[%c0_63, %c0_64] : memref<32x32xbf16, #tpu.memory_space<vmem>>, vector<32x32xbf16>
    %cst_65 = arith.constant dense<0.000000e+00> : vector<32x16xf32>
    %138 = tpu.matmul %137, %19, %cst_65 {dimension_numbers = #tpu.dot_dimension_numbers<[1], [0], [0], [1], [0, 0, 1, 1], [], []>} : vector<32x32xbf16>, vector<32x16xbf16>, vector<32x16xf32> -> vector<32x16xf32>
    %c0_66 = arith.constant 0 : index
    %c0_67 = arith.constant 0 : index
    %139 = vector.load %arg25[%c0_66, %c0_67] : memref<32x1xf32, #tpu.memory_space<vmem>>, vector<32x1xf32>
    %140 = vector.broadcast %139 : vector<32x1xf32> to vector<32x16xf32>
    %141 = arith.addf %138, %140 : vector<32x16xf32>
    %cst_68 = arith.constant 0.353553385 : f32
    %142 = vector.broadcast %cst_68 : f32 to vector<32x8xf32>
    %143 = arith.mulf %131, %142 : vector<32x8xf32>
    %144 = arith.truncf %143 : vector<32x8xf32> to vector<32x8xbf16>
    %145 = vector.shape_cast %144 : vector<32x8xbf16> to vector<4x8x8xbf16>
    %146 = tpu.transpose %145, [0, 2, 1] : vector<4x8x8xbf16> -> vector<4x8x8xbf16>
    %147 = arith.truncf %136 : vector<32x16xf32> to vector<32x16xbf16>
    %148 = vector.shape_cast %147 : vector<32x16xbf16> to vector<4x8x16xbf16>
    %149 = arith.truncf %141 : vector<32x16xf32> to vector<32x16xbf16>
    %150 = vector.shape_cast %149 : vector<32x16xbf16> to vector<4x8x16xbf16>
    "tpu.trace_start"() <{level = 10 : i32, message = "hqd,hdk->hqk"}> : () -> ()
    %cst_69 = arith.constant dense<0.000000e+00> : vector<4x8x16xf32>
    %151 = tpu.matmul %146, %148, %cst_69 {dimension_numbers = #tpu.dot_dimension_numbers<[2], [1], [1], [2], [0, 0, 0, 1, 1, 2], [0], [0]>} : vector<4x8x8xbf16>, vector<4x8x16xbf16>, vector<4x8x16xf32> -> vector<4x8x16xf32>
    "tpu.trace_stop"() : () -> ()
    %152 = vector.shape_cast %15 : vector<8x16xi1> to vector<1x8x16xi1>
    %cst_70 = arith.constant -3.40282347E+38 : f32
    %153 = vector.shape_cast %152 : vector<1x8x16xi1> to vector<1x8x16xi1>
    %154 = vector.broadcast %153 : vector<1x8x16xi1> to vector<4x8x16xi1>
    %155 = vector.broadcast %cst_70 : f32 to vector<4x8x16xf32>
    %156 = arith.select %154, %151, %155 : vector<4x8x16xi1>, vector<4x8x16xf32>
    %cst_71 = arith.constant dense<0xFF800000> : vector<4x8xf32>
    %157 = vector.multi_reduction <maximumf>, %156, %cst_71 [2] : vector<4x8x16xf32> to vector<4x8xf32>
    %158 = vector.shape_cast %157 : vector<4x8xf32> to vector<4x8x1xf32>
    %159 = vector.broadcast %158 : vector<4x8x1xf32> to vector<4x8x16xf32>
    %160 = arith.subf %156, %159 : vector<4x8x16xf32>
    %161 = math.exp %160 : vector<4x8x16xf32>
    %cst_72 = arith.constant dense<0.000000e+00> : vector<4x8xf32>
    %162 = vector.multi_reduction <add>, %161, %cst_72 [2] : vector<4x8x16xf32> to vector<4x8xf32>
    %163 = vector.shape_cast %162 : vector<4x8xf32> to vector<4x8x1xf32>
    %cst_73 = arith.constant 1.000000e+00 : f32
    %164 = vector.broadcast %cst_73 : f32 to vector<4x8x1xf32>
    %165 = arith.divf %164, %163 : vector<4x8x1xf32>
    %166 = vector.broadcast %165 : vector<4x8x1xf32> to vector<4x8x16xf32>
    %167 = arith.mulf %161, %166 : vector<4x8x16xf32>
    %168 = arith.truncf %167 : vector<4x8x16xf32> to vector<4x8x16xbf16>
    %c0_74 = arith.constant 0 : index
    %c0_75 = arith.constant 0 : index
    %c0_76 = arith.constant 0 : index
    %c0_77 = arith.constant 0 : index
    %169 = vector.load %arg34[%c0_74, %c0_75, %c0_76, %c0_77] : memref<1x4x8x16xbf16, #tpu.memory_space<vmem>>, vector<1x4x8x16xbf16>
    %170 = vector.shape_cast %169 : vector<1x4x8x16xbf16> to vector<4x8x16xbf16>
    %171 = vector.shape_cast %168 : vector<4x8x16xbf16> to vector<1x4x8x16xbf16>
    tpu.vector_store %arg34[%c0_74, %c0_75, %c0_76, %c0_77], %171 {strides = array<i32>} : memref<1x4x8x16xbf16, #tpu.memory_space<vmem>>, vector<1x4x8x16xbf16>,
    %172 = arith.truncf %167 : vector<4x8x16xf32> to vector<4x8x16xbf16>
    "tpu.trace_start"() <{level = 10 : i32, message = "hdk,hqk->hdq"}> : () -> ()
    %cst_78 = arith.constant dense<0.000000e+00> : vector<4x8x8xf32>
    %173 = tpu.matmul %150, %172, %cst_78 {dimension_numbers = #tpu.dot_dimension_numbers<[2], [2], [1], [1], [0, 0, 0, 1, 1, 1], [0], [0]>} : vector<4x8x16xbf16>, vector<4x8x16xbf16>, vector<4x8x8xf32> -> vector<4x8x8xf32>
    "tpu.trace_stop"() : () -> ()
    %174 = vector.shape_cast %173 : vector<4x8x8xf32> to vector<32x8xf32>
    %c0_79 = arith.constant 0 : index
    %c0_80 = arith.constant 0 : index
    %175 = vector.load %arg26[%c0_79, %c0_80] : memref<32x32xbf16, #tpu.memory_space<vmem>>, vector<32x32xbf16>
    %176 = arith.truncf %174 : vector<32x8xf32> to vector<32x8xbf16>
    %cst_81 = arith.constant dense<0.000000e+00> : vector<32x8xf32>
    %177 = tpu.matmul %175, %176, %cst_81 {dimension_numbers = #tpu.dot_dimension_numbers<[1], [0], [0], [1], [0, 0, 1, 1], [], []>} : vector<32x32xbf16>, vector<32x8xbf16>, vector<32x8xf32> -> vector<32x8xf32>
    %c0_82 = arith.constant 0 : index
    %c0_83 = arith.constant 0 : index
    %178 = vector.load %arg27[%c0_82, %c0_83] : memref<32x1xf32, #tpu.memory_space<vmem>>, vector<32x1xf32>
    %179 = vector.broadcast %178 : vector<32x1xf32> to vector<32x8xf32>
    %180 = arith.addf %177, %179 : vector<32x8xf32>
    %181 = arith.addf %180, %101 : vector<32x8xf32>
    %c0_84 = arith.constant 0 : index
    %c0_85 = arith.constant 0 : index
    %182 = vector.load %arg10[%c0_84, %c0_85] : memref<32x1xf32, #tpu.memory_space<vmem>>, vector<32x1xf32>
    %c0_86 = arith.constant 0 : index
    %c0_87 = arith.constant 0 : index
    %183 = vector.load %arg11[%c0_86, %c0_87] : memref<32x1xf32, #tpu.memory_space<vmem>>, vector<32x1xf32>
    %cst_88 = arith.constant dense<0.000000e+00> : vector<8xf32>
    %184 = vector.multi_reduction <add>, %181, %cst_88 [0] : vector<32x8xf32> to vector<8xf32>
    %185 = vector.shape_cast %184 : vector<8xf32> to vector<1x8xf32>
    %cst_89 = arith.constant 3.200000e+01 : f32
    %186 = vector.broadcast %cst_89 : f32 to vector<1x8xf32>
    %187 = arith.divf %185, %186 : vector<1x8xf32>
    %188 = vector.broadcast %187 : vector<1x8xf32> to vector<32x8xf32>
    %189 = arith.subf %181, %188 : vector<32x8xf32>
    %190 = arith.mulf %189, %189 : vector<32x8xf32>
    %cst_90 = arith.constant dense<0.000000e+00> : vector<8xf32>
    %191 = vector.multi_reduction <add>, %190, %cst_90 [0] : vector<32x8xf32> to vector<8xf32>
    %192 = vector.shape_cast %191 : vector<8xf32> to vector<1x8xf32>
    %cst_91 = arith.constant 3.200000e+01 : f32
    %193 = vector.broadcast %cst_91 : f32 to vector<1x8xf32>
    %194 = arith.divf %192, %193 : vector<1x8xf32>
    %195 = vector.broadcast %187 : vector<1x8xf32> to vector<32x8xf32>
    %196 = arith.subf %181, %195 : vector<32x8xf32>
    %cst_92 = arith.constant 9.99999996E-13 : f32
    %197 = vector.broadcast %cst_92 : f32 to vector<1x8xf32>
    %198 = arith.addf %194, %197 : vector<1x8xf32>
    %199 = math.rsqrt %198 : vector<1x8xf32>
    %200 = vector.broadcast %199 : vector<1x8xf32> to vector<32x8xf32>
    %201 = arith.mulf %196, %200 : vector<32x8xf32>
    %202 = vector.broadcast %182 : vector<32x1xf32> to vector<32x8xf32>
    %203 = arith.mulf %201, %202 : vector<32x8xf32>
    %204 = vector.broadcast %183 : vector<32x1xf32> to vector<32x8xf32>
    %205 = arith.addf %203, %204 : vector<32x8xf32>
    %c0_93 = arith.constant 0 : index
    %c0_94 = arith.constant 0 : index
    %206 = vector.load %arg28[%c0_93, %c0_94] : memref<64x32xbf16, #tpu.memory_space<vmem>>, vector<64x32xbf16>
    %207 = arith.truncf %205 : vector<32x8xf32> to vector<32x8xbf16>
    %cst_95 = arith.constant dense<0.000000e+00> : vector<64x8xf32>
    %208 = tpu.matmul %206, %207, %cst_95 {dimension_numbers = #tpu.dot_dimension_numbers<[1], [0], [0], [1], [0, 0, 1, 1], [], []>} : vector<64x32xbf16>, vector<32x8xbf16>, vector<64x8xf32> -> vector<64x8xf32>
    %c0_96 = arith.constant 0 : index
    %c0_97 = arith.constant 0 : index
    %209 = vector.load %arg29[%c0_96, %c0_97] : memref<64x1xf32, #tpu.memory_space<vmem>>, vector<64x1xf32>
    %210 = vector.broadcast %209 : vector<64x1xf32> to vector<64x8xf32>
    %211 = arith.addf %208, %210 : vector<64x8xf32>
    %cst_98 = arith.constant 0.000000e+00 : f32
    %212 = vector.broadcast %cst_98 : f32 to vector<64x8xf32>
    %213 = arith.maximumf %211, %212 : vector<64x8xf32>
    %c0_99 = arith.constant 0 : index
    %c0_100 = arith.constant 0 : index
    %214 = vector.load %arg30[%c0_99, %c0_100] : memref<32x64xbf16, #tpu.memory_space<vmem>>, vector<32x64xbf16>
    %215 = arith.truncf %213 : vector<64x8xf32> to vector<64x8xbf16>
    %cst_101 = arith.constant dense<0.000000e+00> : vector<32x8xf32>
    %216 = tpu.matmul %214, %215, %cst_101 {dimension_numbers = #tpu.dot_dimension_numbers<[1], [0], [0], [1], [0, 0, 1, 1], [], []>} : vector<32x64xbf16>, vector<64x8xbf16>, vector<32x8xf32> -> vector<32x8xf32>
    %c0_102 = arith.constant 0 : index
    %c0_103 = arith.constant 0 : index
    %217 = vector.load %arg31[%c0_102, %c0_103] : memref<32x1xf32, #tpu.memory_space<vmem>>, vector<32x1xf32>
    %218 = vector.broadcast %217 : vector<32x1xf32> to vector<32x8xf32>
    %219 = arith.addf %216, %218 : vector<32x8xf32>
    %220 = arith.addf %219, %181 : vector<32x8xf32>
    %221 = tpu.transpose %220, [1, 0] : vector<32x8xf32> -> vector<8x32xf32>
    %c0_104 = arith.constant 0 : index
    %c0_105 = arith.constant 0 : index
    %c0_106 = arith.constant 0 : index
    %222 = vector.load %arg32[%c0_104, %c0_105, %c0_106] : memref<1x8x32xf32, #tpu.memory_space<vmem>>, vector<1x8x32xf32>
    %223 = vector.shape_cast %222 : vector<1x8x32xf32> to vector<8x32xf32>
    %224 = vector.shape_cast %221 : vector<8x32xf32> to vector<1x8x32xf32>
    tpu.vector_store %arg32[%c0_104, %c0_105, %c0_106], %224 {strides = array<i32>} : memref<1x8x32xf32, #tpu.memory_space<vmem>>, vector<1x8x32xf32>,
    return
  }
  func.func @transform_0(%arg0: i32, %arg1: i32, %arg2: memref<2xi32, #tpu.memory_space<smem>>, %arg3: memref<2xi32, #tpu.memory_space<smem>>) -> (i32, i32, i32) {
    %c0_i32 = arith.constant 0 : i32
    %c0_i32_0 = arith.constant 0 : i32
    %c0_i32_1 = arith.constant 0 : i32
    return %arg0, %c0_i32, %c0_i32_0 : i32, i32, i32
  }
  func.func @transform_1(%arg0: i32, %arg1: i32, %arg2: memref<2xi32, #tpu.memory_space<smem>>, %arg3: memref<2xi32, #tpu.memory_space<smem>>) -> (i32, i32, i32) {
    %c0_i32 = arith.constant 0 : i32
    %c0_i32_0 = arith.constant 0 : i32
    %c0_i32_1 = arith.constant 0 : i32
    return %arg0, %c0_i32, %c0_i32_0 : i32, i32, i32
  }
  func.func @transform_2(%arg0: i32, %arg1: i32, %arg2: memref<2xi32, #tpu.memory_space<smem>>, %arg3: memref<2xi32, #tpu.memory_space<smem>>) -> (i32, i32) {
    %c0_i32 = arith.constant 0 : i32
    %c0_i32_0 = arith.constant 0 : i32
    %c0_i32_1 = arith.constant 0 : i32
    return %c0_i32, %c0_i32_0 : i32, i32
  }
  func.func @transform_3(%arg0: i32, %arg1: i32, %arg2: memref<2xi32, #tpu.memory_space<smem>>, %arg3: memref<2xi32, #tpu.memory_space<smem>>) -> (i32, i32) {
    %c0_i32 = arith.constant 0 : i32
    %c0_i32_0 = arith.constant 0 : i32
    %c0_i32_1 = arith.constant 0 : i32
    return %c0_i32, %c0_i32_0 : i32, i32
  }
  func.func @transform_4(%arg0: i32, %arg1: i32, %arg2: memref<2xi32, #tpu.memory_space<smem>>, %arg3: memref<2xi32, #tpu.memory_space<smem>>) -> (i32, i32) {
    %c0_i32 = arith.constant 0 : i32
    %c0_i32_0 = arith.constant 0 : i32
    %c0_i32_1 = arith.constant 0 : i32
    return %c0_i32, %c0_i32_0 : i32, i32
  }
  func.func @transform_5(%arg0: i32, %arg1: i32, %arg2: memref<2xi32, #tpu.memory_space<smem>>, %arg3: memref<2xi32, #tpu.memory_space<smem>>) -> (i32, i32) {
    %c0_i32 = arith.constant 0 : i32
    %c0_i32_0 = arith.constant 0 : i32
    %c0_i32_1 = arith.constant 0 : i32
    return %c0_i32, %c0_i32_0 : i32, i32
  }
  func.func @transform_6(%arg0: i32, %arg1: i32, %arg2: memref<2xi32, #tpu.memory_space<smem>>, %arg3: memref<2xi32, #tpu.memory_space<smem>>) -> (i32, i32) {
    %c0_i32 = arith.constant 0 : i32
    %c0_i32_0 = arith.constant 0 : i32
    %c0_i32_1 = arith.constant 0 : i32
    return %c0_i32, %c0_i32_0 : i32, i32
  }
  func.func @transform_7(%arg0: i32, %arg1: i32, %arg2: memref<2xi32, #tpu.memory_space<smem>>, %arg3: memref<2xi32, #tpu.memory_space<smem>>) -> (i32, i32) {
    %c0_i32 = arith.constant 0 : i32
    %c0_i32_0 = arith.constant 0 : i32
    %c0_i32_1 = arith.constant 0 : i32
    return %c0_i32, %c0_i32_0 : i32, i32
  }
  func.func @transform_8(%arg0: i32, %arg1: i32, %arg2: memref<2xi32, #tpu.memory_space<smem>>, %arg3: memref<2xi32, #tpu.memory_space<smem>>) -> (i32, i32) {
    %c0_i32 = arith.constant 0 : i32
    %c0_i32_0 = arith.constant 0 : i32
    %c0_i32_1 = arith.constant 0 : i32
    return %c0_i32, %c0_i32_0 : i32, i32
  }
  func.func @transform_9(%arg0: i32, %arg1: i32, %arg2: memref<2xi32, #tpu.memory_space<smem>>, %arg3: memref<2xi32, #tpu.memory_space<smem>>) -> (i32, i32) {
    %c0_i32 = arith.constant 0 : i32
    %c0_i32_0 = arith.constant 0 : i32
    %c0_i32_1 = arith.constant 0 : i32
    return %c0_i32, %c0_i32_0 : i32, i32
  }
  func.func @transform_10(%arg0: i32, %arg1: i32, %arg2: memref<2xi32, #tpu.memory_space<smem>>, %arg3: memref<2xi32, #tpu.memory_space<smem>>) -> (i32, i32) {
    %c0_i32 = arith.constant 0 : i32
    %c0_i32_0 = arith.constant 0 : i32
    %c0_i32_1 = arith.constant 0 : i32
    return %c0_i32, %c0_i32_0 : i32, i32
  }
  func.func @transform_11(%arg0: i32, %arg1: i32, %arg2: memref<2xi32, #tpu.memory_space<smem>>, %arg3: memref<2xi32, #tpu.memory_space<smem>>) -> (i32, i32) {
    %c0_i32 = arith.constant 0 : i32
    %c0_i32_0 = arith.constant 0 : i32
    %c0_i32_1 = arith.constant 0 : i32
    return %c0_i32, %c0_i32_0 : i32, i32
  }
  func.func @transform_12(%arg0: i32, %arg1: i32, %arg2: memref<2xi32, #tpu.memory_space<smem>>, %arg3: memref<2xi32, #tpu.memory_space<smem>>) -> (i32, i32) {
    %c0_i32 = arith.constant 0 : i32
    %c0_i32_0 = arith.constant 0 : i32
    %c0_i32_1 = arith.constant 0 : i32
    return %c0_i32, %c0_i32_0 : i32, i32
  }
  func.func @transform_13(%arg0: i32, %arg1: i32, %arg2: memref<2xi32, #tpu.memory_space<smem>>, %arg3: memref<2xi32, #tpu.memory_space<smem>>) -> (i32, i32) {
    %c0_i32 = arith.constant 0 : i32
    %c0_i32_0 = arith.constant 0 : i32
    %c0_i32_1 = arith.constant 0 : i32
    return %c0_i32, %c0_i32_0 : i32, i32
  }
  func.func @transform_14(%arg0: i32, %arg1: i32, %arg2: memref<2xi32, #tpu.memory_space<smem>>, %arg3: memref<2xi32, #tpu.memory_space<smem>>) -> (i32, i32) {
    %c0_i32 = arith.constant 0 : i32
    %c0_i32_0 = arith.constant 0 : i32
    %c0_i32_1 = arith.constant 0 : i32
    return %c0_i32, %c0_i32_0 : i32, i32
  }
  func.func @transform_15(%arg0: i32, %arg1: i32, %arg2: memref<2xi32, #tpu.memory_space<smem>>, %arg3: memref<2xi32, #tpu.memory_space<smem>>) -> (i32, i32) {
    %c0_i32 = arith.constant 0 : i32
    %c0_i32_0 = arith.constant 0 : i32
    %c0_i32_1 = arith.constant 0 : i32
    return %c0_i32, %c0_i32_0 : i32, i32
  }
  func.func @transform_16(%arg0: i32, %arg1: i32, %arg2: memref<2xi32, #tpu.memory_space<smem>>, %arg3: memref<2xi32, #tpu.memory_space<smem>>) -> (i32, i32) {
    %c0_i32 = arith.constant 0 : i32
    %c0_i32_0 = arith.constant 0 : i32
    %c0_i32_1 = arith.constant 0 : i32
    return %c0_i32, %c0_i32_0 : i32, i32
  }
  func.func @transform_17(%arg0: i32, %arg1: i32, %arg2: memref<2xi32, #tpu.memory_space<smem>>, %arg3: memref<2xi32, #tpu.memory_space<smem>>) -> (i32, i32) {
    %c0_i32 = arith.constant 0 : i32
    %c0_i32_0 = arith.constant 0 : i32
    %c0_i32_1 = arith.constant 0 : i32
    return %c0_i32, %c0_i32_0 : i32, i32
  }
  func.func @transform_18(%arg0: i32, %arg1: i32, %arg2: memref<2xi32, #tpu.memory_space<smem>>, %arg3: memref<2xi32, #tpu.memory_space<smem>>) -> (i32, i32) {
    %c0_i32 = arith.constant 0 : i32
    %c0_i32_0 = arith.constant 0 : i32
    %c0_i32_1 = arith.constant 0 : i32
    return %c0_i32, %c0_i32_0 : i32, i32
  }
  func.func @transform_19(%arg0: i32, %arg1: i32, %arg2: memref<2xi32, #tpu.memory_space<smem>>, %arg3: memref<2xi32, #tpu.memory_space<smem>>) -> (i32, i32) {
    %c0_i32 = arith.constant 0 : i32
    %c0_i32_0 = arith.constant 0 : i32
    %c0_i32_1 = arith.constant 0 : i32
    return %c0_i32, %c0_i32_0 : i32, i32
  }
  func.func @transform_20(%arg0: i32, %arg1: i32, %arg2: memref<2xi32, #tpu.memory_space<smem>>, %arg3: memref<2xi32, #tpu.memory_space<smem>>) -> (i32, i32) {
    %c0_i32 = arith.constant 0 : i32
    %c0_i32_0 = arith.constant 0 : i32
    %c0_i32_1 = arith.constant 0 : i32
    return %c0_i32, %c0_i32_0 : i32, i32
  }
  func.func @transform_21(%arg0: i32, %arg1: i32, %arg2: memref<2xi32, #tpu.memory_space<smem>>, %arg3: memref<2xi32, #tpu.memory_space<smem>>) -> (i32, i32) {
    %c0_i32 = arith.constant 0 : i32
    %c0_i32_0 = arith.constant 0 : i32
    %c0_i32_1 = arith.constant 0 : i32
    return %c0_i32, %c0_i32_0 : i32, i32
  }
  func.func @transform_22(%arg0: i32, %arg1: i32, %arg2: memref<2xi32, #tpu.memory_space<smem>>, %arg3: memref<2xi32, #tpu.memory_space<smem>>) -> (i32, i32) {
    %c0_i32 = arith.constant 0 : i32
    %c0_i32_0 = arith.constant 0 : i32
    %c0_i32_1 = arith.constant 0 : i32
    return %c0_i32, %c0_i32_0 : i32, i32
  }
  func.func @transform_23(%arg0: i32, %arg1: i32, %arg2: memref<2xi32, #tpu.memory_space<smem>>, %arg3: memref<2xi32, #tpu.memory_space<smem>>) -> (i32, i32) {
    %c0_i32 = arith.constant 0 : i32
    %c0_i32_0 = arith.constant 0 : i32
    %c0_i32_1 = arith.constant 0 : i32
    return %c0_i32, %c0_i32_0 : i32, i32
  }
  func.func @transform_24(%arg0: i32, %arg1: i32, %arg2: memref<2xi32, #tpu.memory_space<smem>>, %arg3: memref<2xi32, #tpu.memory_space<smem>>) -> (i32, i32) {
    %c0_i32 = arith.constant 0 : i32
    %c0_i32_0 = arith.constant 0 : i32
    %c0_i32_1 = arith.constant 0 : i32
    return %c0_i32, %c0_i32_0 : i32, i32
  }
  func.func @transform_25(%arg0: i32, %arg1: i32, %arg2: memref<2xi32, #tpu.memory_space<smem>>, %arg3: memref<2xi32, #tpu.memory_space<smem>>) -> (i32, i32) {
    %c0_i32 = arith.constant 0 : i32
    %c0_i32_0 = arith.constant 0 : i32
    %c0_i32_1 = arith.constant 0 : i32
    return %c0_i32, %c0_i32_0 : i32, i32
  }
  func.func @transform_26(%arg0: i32, %arg1: i32, %arg2: memref<2xi32, #tpu.memory_space<smem>>, %arg3: memref<2xi32, #tpu.memory_space<smem>>) -> (i32, i32) {
    %c0_i32 = arith.constant 0 : i32
    %c0_i32_0 = arith.constant 0 : i32
    %c0_i32_1 = arith.constant 0 : i32
    return %c0_i32, %c0_i32_0 : i32, i32
  }
  func.func @transform_27(%arg0: i32, %arg1: i32, %arg2: memref<2xi32, #tpu.memory_space<smem>>, %arg3: memref<2xi32, #tpu.memory_space<smem>>) -> (i32, i32) {
    %c0_i32 = arith.constant 0 : i32
    %c0_i32_0 = arith.constant 0 : i32
    %c0_i32_1 = arith.constant 0 : i32
    return %c0_i32, %c0_i32_0 : i32, i32
  }
  func.func @transform_28(%arg0: i32, %arg1: i32, %arg2: memref<2xi32, #tpu.memory_space<smem>>, %arg3: memref<2xi32, #tpu.memory_space<smem>>) -> (i32, i32, i32) {
    %c0_i32 = arith.constant 0 : i32
    %c0_i32_0 = arith.constant 0 : i32
    return %arg0, %arg1, %c0_i32 : i32, i32, i32
  }
  func.func @transform_29(%arg0: i32, %arg1: i32, %arg2: memref<2xi32, #tpu.memory_space<smem>>, %arg3: memref<2xi32, #tpu.memory_space<smem>>) -> (i32, i32, i32, i32) {
    %c0_i32 = arith.constant 0 : i32
    %c0_i32_0 = arith.constant 0 : i32
    %c0_i32_1 = arith.constant 0 : i32
    return %arg0, %c0_i32, %arg1, %c0_i32_0 : i32, i32, i32, i32
  }
  func.func @transform_30(%arg0: i32, %arg1: i32, %arg2: memref<2xi32, #tpu.memory_space<smem>>, %arg3: memref<2xi32, #tpu.memory_space<smem>>) -> (i32, i32, i32, i32) {
    %c0_i32 = arith.constant 0 : i32
    %c0_i32_0 = arith.constant 0 : i32
    %c0_i32_1 = arith.constant 0 : i32
    return %arg0, %c0_i32, %arg1, %c0_i32_0 : i32, i32, i32, i32
  }
}

</mosaic_0001>

<bundles_post_ra>
// kernel: tpu_custom_call.1
= control target key start
LH: loop header
LB: loop body
LE: loop exit
PB: predicated region body
PF: predicated region fallthrough
CT: control target
= control target key end

     0   :  { %s4436_s6 = smov 2   ;;  %s4437_s10 = smov 3   ;;  %s5284_s0 = inlined_call_operand.smem [shape: u32[33], index: -1, kind: input, shape index: {}] }
   0x1   :  { %s4486_s5 = sld [smem:[%s5284_s0]]   ;;  %s4438_s14 = smov 4  }
   0x2   :  { %s4491_s9 = sld [smem:[%s5284_s0 + %s4436_s6]]   ;;  %s4439_s18 = smov 5  }
   0x3   :  { %s4496_s13 = sld [smem:[%s5284_s0 + %s4437_s10]]   ;;  %s4440_s22 = smov 6  }
   0x4   :  { %s4501_s17 = sld [smem:[%s5284_s0 + %s4438_s14]]   ;;  %s4441_s26 = smov 7  }
   0x5   :  { %s4506_s21 = sld [smem:[%s5284_s0 + %s4439_s18]]   ;;  %s4442_s30 = smov 8  }
   0x6   :  { %s4511_s25 = sld [smem:[%s5284_s0 + %s4440_s22]]   ;;  %s4443_s4 = smov 9  }
   0x7   :  { %s4516_s29 = sld [smem:[%s5284_s0 + %s4441_s26]]   ;;  %s4444_s10 = smov 10  }
   0x8   :  { %5324 = sst [smem:[#allocation13_spill]] %s4491_s9  ;;  %s4445_s15 = smov 11  }
   0x9   :  { %5325 = sst [smem:[#allocation14_spill]] %s4496_s13  ;;  %s4446_s20 = smov 12  }
   0xa   :  { %5326 = sst [smem:[#allocation15_spill]] %s4501_s17  ;;  %s4447_s26 = smov 13  }
   0xb   :  { %5327 = sst [smem:[#allocation16_spill]] %s4506_s21  ;;  %s4448_s1 = smov 14  }
   0xc   :  { %s4521_s3 = sld [smem:[%s5284_s0 + %s4442_s30]]   ;;  %s4449_s7 = smov 15  }
   0xd   :  { %s4526_s8 = sld [smem:[%s5284_s0 + %s4443_s4]]   ;;  %s4451_s22 = smov 17  }
   0xe   :  { %s4531_s14 = sld [smem:[%s5284_s0 + %s4444_s10]]   ;;  %s4452_s28 = smov 18  }
   0xf   :  { %s4536_s19 = sld [smem:[%s5284_s0 + %s4445_s15]]   ;;  %s4450_s15 = smov 16  }
  0x10   :  { %s4541_s24 = sld [smem:[%s5284_s0 + %s4446_s20]]  }
  0x11   :  { %s4546_s30 = sld [smem:[%s5284_s0 + %s4447_s26]]  }
  0x12   :  { %5328 = sst [smem:[#allocation17_spill]] %s4521_s3 }
  0x13   :  { %5329 = sst [smem:[#allocation18_spill]] %s4526_s8 }
  0x14   :  { %5330 = sst [smem:[#allocation19_spill]] %s4531_s14 }
  0x15   :  { %5331 = sst [smem:[#allocation20_spill]] %s4536_s19 }
  0x16   :  { %5332 = sst [smem:[#allocation21_spill]] %s4541_s24 }
  0x17   :  { %s4551_s6 = sld [smem:[%s5284_s0 + %s4448_s1]]  }
  0x18   :  { %s4556_s12 = sld [smem:[%s5284_s0 + %s4449_s7]]   ;;  %s4453_s7 = smov 19  }
  0x19   :  { %s4561_s20 = sld [smem:[%s5284_s0 + %s4450_s15]]   ;;  %s4454_s15 = smov 20  }
  0x1a   :  { %s4566_s27 = sld [smem:[%s5284_s0 + %s4451_s22]]   ;;  %s4455_s22 = smov 21  }
  0x1b   :  { %s4571_s4 = sld [smem:[%s5284_s0 + %s4452_s28]]   ;;  %s4456_s28 = smov 22  }
  0x1c   :  { %s4576_s8 = sld [smem:[%s5284_s0 + %s4453_s7]]   ;;  %s4457_s7 = smov 23  }
  0x1d   :  { %5333 = sst [smem:[#allocation22_spill]] %s4551_s6 }
  0x1e   :  { %5334 = sst [smem:[#allocation23_spill]] %s4556_s12 }
  0x1f   :  { %5335 = sst [smem:[#allocation24_spill]] %s4561_s20 }
  0x20   :  { %s4581_s3 = sld [smem:[%s5284_s0 + %s4454_s15]]   ;;  %s4458_s15 = smov 24  }
  0x21   :  { %5336 = sst [smem:[#allocation25_spill]] %s4571_s4 }
  0x22   :  { %5337 = sst [smem:[#allocation26_spill]] %s4576_s8 }
  0x23   :  { %s4586_s13 = sld [smem:[%s5284_s0 + %s4455_s22]]   ;;  %s4459_s22 = smov 25  }
  0x24   :  { %s4591_s4 = sld [smem:[%s5284_s0 + %s4456_s28]]   ;;  %s4460_s28 = smov 26  }
  0x25   :  { %s4596_s20 = sld [smem:[%s5284_s0 + %s4457_s7]]   ;;  %s4461_s7 = smov 27  }
  0x26   :  { %5338 = sst [smem:[#allocation27_spill]] %s4581_s3 }
  0x27   :  { %s4601_s3 = sld [smem:[%s5284_s0 + %s4458_s15]]   ;;  %s4462_s15 = smov 28  }
  0x28   :  { %s4606_s1 = sld [smem:[%s5284_s0 + %s4459_s22]]   ;;  %s4463_s22 = smov 29  }
  0x29   :  { %5339 = sst [smem:[#allocation28_spill]] %s4586_s13 }
  0x2a   :  { %5340 = sst [smem:[#allocation29_spill]] %s4591_s4  ;;  %s4464_s4 = smov 30  }
  0x2b   :  { %5341 = sst [smem:[#allocation30_spill]] %s4596_s20  ;;  %s4465_s20 = smov 31  }
  0x2c   :  { %s4611_s10 = sld [smem:[%s5284_s0 + %s4460_s28]]  }
  0x2d   :  { %5342 = sst [smem:[#allocation31_spill]] %s4601_s3  ;;  %s4466_s3 = smov 32  }
  0x2e   :  { %5343 = sst [smem:[#allocation32_spill]] %s4606_s1  ;;  %s71_s1 = sshll.u32 %s4486_s5, 4  ;;  %s72_s1 = int_to_ptr.vmem [resolvable:$true] %s71_s1 }
  0x2f   :  { %s4616_s16 = sld [smem:[%s5284_s0 + %s4461_s7]]   ;;  %p4275_p1 = scmp.lt.s32.totalorder %s72_s1, %s72_s1 }
  0x30   :  { %s4621_s23 = sld [smem:[%s5284_s0 + %s4462_s15]]  }
  0x31   :  { %s4626_s13 = sld [smem:[%s5284_s0 + %s4463_s22]]   ;;  %s4270_s22 = scalar_lea.vmem %s72_s1, 16 }
  0x32   :  { %5344 = sst [smem:[#allocation33_spill]] %s4611_s10  ;;  %p4271_p0 = scmp.ne.s32.totalorder %s72_s1, %s4270_s22 }
  0x33   :  { %s4631_s10 = sld [smem:[%s5284_s0 + %s4464_s4]]   ;;  %p4276_p2 = scmp.lt.s32.totalorder %s4270_s22, %s4270_s22 }
  0x35   :  { %5345 = sst [smem:[#allocation34_spill]] %s4616_s16  ;;  %p4277_p3 = por %p4276_p2, %p4275_p1 }
  0x36   :  { %5346 = sst [smem:[#allocation35_spill]] %s4621_s23 }
  0x37   :  { %5347 = sst [smem:[#allocation36_spill]] %s4626_s13  ;;  %p4278_p4 = pnand %p4277_p3, %p4271_p0 }
  0x38   :  { %s4636_s16 = sld [smem:[%s5284_s0 + %s4465_s20]]  }
  0x39   :  { %s4641_s23 = sld [smem:[%s5284_s0 + %s4466_s3]]  }
  0x3e   :  { %5348 = sst [smem:[#allocation37_spill]] %s4636_s16 }
  0x3f   :  { %4281 = shalt.err (!%p4278_p4)  }
  0x40   :  { %s4467_s26 = smov [#allocation3]   ;;  %s4468_s4 = smov 1  }
  0x41   :  { %74 = dma.vmem_to_smem %s72_s1, 16, %s4467_s26, [#allocation2] }
  0x42   :  { %s3674_s20 = sld [smem:[%s5284_s0 + %s4468_s4]]  }
  0x48   :  { %s75_s7 = sshll.u32 %s3674_s20, 4  ;;  %s76_s7 = int_to_ptr.vmem [resolvable:$true] %s75_s7 }
  0x49   :  { %s4282_s11 = scalar_lea.vmem %s76_s7, 16  ;;  %p4287_p6 = scmp.lt.s32.totalorder %s76_s7, %s76_s7 }
  0x4a   :  { %p4283_p5 = scmp.ne.s32.totalorder %s76_s7, %s4282_s11  ;;  %p4288_p7 = scmp.lt.s32.totalorder %s4282_s11, %s4282_s11 }
  0x4c   :  { %p4289_p8 = por %p4288_p7, %p4287_p6 }
  0x4e   :  { %p4290_p9 = pnand %p4289_p8, %p4283_p5 }
  0x50   :  { %4293 = shalt.err (!%p4290_p9)  }
  0x51   :  { %s4469_s5 = smov [#allocation4]  }
  0x52   :  { %78 = dma.vmem_to_smem %s76_s7, 16, %s4469_s5, [#allocation2] }
  0x53   :  { %4402 = dma.done.wait [#allocation2], 32 }
  0x54   :  { %4403 = vsyncadd [#allocation2], 4294967264 }
  0x55   :  { %80 = sfence }
  0x56   :  { %81 = vsyncpa [#allocation6], 0 }
  0x57   :  { %83 = vsyncpa [#allocation6 + $0x1], 0 }
  0x58   :  { %84 = vsyncpa [#allocation8], 0 }
  0x59   :  { %86 = vsyncpa [#allocation8 + $0x1], 0  ;;  %s4647_s3 = smov 0   ;;  %s4649_s0 = smov 0  }
  0x5a   :  { %s4651_s15 = smov 0   ;;  %s4653_s18 = smov 0  }
  0x5b   :  { %s4655_s1 = smov 0   ;;  %s4657_s22 = smov 0  }
  0x5c LB: > { %s5349_s24 = sld [smem:[#allocation21_spill]]  ;;  %s5350_s21 = sld [smem:[#allocation16_spill]]  ;;  %s4426_s18 = sphi %s4653_s18, %s5388_s18   ;;  %s4422_s15 = sphi %s4651_s15, %s5387_s15   ;;  %s4418_s0 = sphi %s4649_s0, %s5386_s0   ;;  %s4414_s3 = sphi %s4647_s3, %s5385_s3   ;;  %s4434_s22 = sphi %s4657_s22, %s92_s22   ;;  %s4430_s1 = sphi %s4655_s1, %s5389_s1  }
  0x5d   : > { %s5351_s16 = sld [smem:[#allocation37_spill]]  ;;  %s5352_s19 = sld [smem:[#allocation20_spill]] }
  0x5e   : > { %s5353_s17 = sld [smem:[#allocation15_spill]]  ;;  %s5354_s14 = sld [smem:[#allocation19_spill]] }
  0x5f   : > { %s5355_s13 = sld [smem:[#allocation36_spill]]  ;;  %s5356_s12 = sld [smem:[#allocation23_spill]] }
  0x60   : > { %s5357_s8 = sld [smem:[#allocation26_spill]]  ;;  %s5358_s6 = sld [smem:[#allocation22_spill]] }
  0x61   : > { %s5299_s26 = sadd.s32 4294967295, %s4434_s22   ;;  %s5298_s4 = sadd.s32 4294967294, %s4434_s22  }
  0x62   : > { %s104_s28 = sadd.s32 1, %s4430_s1  ;;  %s711_s2 = sadd.s32 1, %s4422_s15 }
  0x63   : > { %p106_p10 = scmp.ge.s32.totalorder %s104_s28, 2  ;;  %p721_p11 = scmp.ne.s32.totalorder %s4422_s15, %s4418_s0 }
  0x64   : > { %p722_p12 = scmp.eq.s32.totalorder %s5299_s26, 1  ;;  %p727_p13 = scmp.ne.s32.totalorder %s4418_s0, %s4414_s3 }
  0x65   : > { %s5391_s28 = smov (%p106_p10, %s104_s28), 0  ;;  %p728_p1 = scmp.eq.s32.totalorder %s5298_s4, 1 }
  0x66   : > { %p4689_p0 = por %p722_p12, %p721_p11  ;;  %s706_s7 = ssub.s32 %s4430_s1, %s5391_s28 }
  0x67   : > { %p3710_p2 = scmp.ge.s32.totalorder %s4434_s22, 1  ;;  %p709_p3 = scmp.eq.s32.totalorder %s706_s7, 0 }
  0x68   : > { %p4698_p4 = por %p728_p1, %p727_p13  ;;  %p896_p5 = scmp.lt.s32.totalorder %s4434_s22, 3 }
  0x69   : > { %s4704_s5 = scalar_select %p709_p3, %s4422_s15, %s711_s2  }
  0x6a   : > { %p897_p6 = pnand %p3710_p2, %p896_p5 }
  0x6b   : > { %s5361_s9 = sld [smem:[#allocation13_spill]] (!%p897_p6)  ;;  %v1027_v0 = vld [vmem:[%s5350_s21] sm:$0xff] (!%p897_p6)  ;;  %p989_p7 = scmp.lt.s32.totalorder (!%p897_p6), %s4426_s18, 1  ;;  %v4470_v2 = vmov (!%p897_p6), 0   ;;  %v1028_v3 = vld [vmem:[%s5350_s21 + $0x8] sm:$0xff] (!%p897_p6)  ;;  %v1026_v5 = vld [vmem:[%s5353_s17 + $0x18] sm:$0xff] (!%p897_p6) }
  0x6c   : > { %900 = sbr.rel (%p897_p6) target bundleno = 3646 (0xe3e), region = 132  ;;  %v1023_v1 = vld [vmem:[%s5353_s17] sm:$0xff] (!%p897_p6)  ;;  %4207 = vset.pattern.permute.xlu1 (!%p897_p6), %v4470_v2  ;;  %4206 = vset.pattern.permute.xlu0 (!%p897_p6), %v4470_v2  ;;  %v1024_v4 = vld [vmem:[%s5353_s17 + $0x8] sm:$0xff] (!%p897_p6)  ;;  %v1025_v6 = vld [vmem:[%s5353_s17 + $0x10] sm:$0xff] (!%p897_p6)  ;;  %vm1031_vm0 = vcmask (!%p897_p6), 64512   ;;  %vm1163_vm1 = vcmask (!%p897_p6), 261120  }
  0x6d   : > { %1101 = vperm.xlu1 (!%p897_p6), %4207, %v1027_v0   ;;  %1077 = vperm.xlu0 (!%p897_p6), %4206, %v1023_v1   ;;  %v1030_v7 = vld [vmem:[%s5350_s21 + $0x18] sm:$0xff] (!%p897_p6)  ;;  %v1029_v8 = vld [vmem:[%s5350_s21 + $0x10] sm:$0xff] (!%p897_p6)  ;;  %v1130_v11 = vld [vmem:[%s5352_s19 + $0x8] sm:$0xff] (!%p897_p6)  ;;  %vm4472_vm2 = vmmov (!%p897_p6), 0   ;;  %vm1516_vm3 = vcmask (!%p897_p6), 1043456   ;;  %vm1756_vm7 = vcmask (!%p897_p6), 60416  }
  0x6e   : > { %v1129_v12 = vld [vmem:[%s5352_s19] sm:$0xff] (!%p897_p6)  ;;  %v1132_v16 = vld [vmem:[%s5352_s19 + $0x18] sm:$0xff] (!%p897_p6)  ;;  %v1131_v17 = vld [vmem:[%s5352_s19 + $0x10] sm:$0xff] (!%p897_p6)  ;;  %vm2733_vm9 = vcmask (!%p897_p6), 130048   ;;  %vm2786_vm10 = vcmask (!%p897_p6), 125952   ;;  %vm3377_vm11 = vcmask (!%p897_p6), 523264  }
  0x6f   : > { %v4208_v18 = vld [vmem:[%s5354_s14] sm:$0xff] (!%p897_p6)   ;;  %v1224_v22 = vld [vmem:[%s4546_s30 + $0x8] sm:$0xff] (!%p897_p6)  ;;  %v1226_v27 = vld [vmem:[%s4546_s30 + $0x18] sm:$0xff] (!%p897_p6) }
  0x70   : > { %v4209_v19 = vld [vmem:[%s5349_s24] sm:$0xff] (!%p897_p6)   ;;  %3922 = vmatprep.mubr.msk.bf16.mxu0 (!%p897_p6), %vm1163_vm1, %v4208_v18  ;;  %v1225_v28 = vld [vmem:[%s4546_s30 + $0x10] sm:$0xff] (!%p897_p6) }
  0x71   : > { %1106 = vperm.xlu1 (!%p897_p6), %4207, %v1028_v3   ;;  %1082 = vperm.xlu0 (!%p897_p6), %4206, %v1024_v4   ;;  %v1223_v23 = vld [vmem:[%s4546_s30] sm:$0xff] (!%p897_p6) }
  0x72   : > { %3930 = vmatprep.mubr.msk.bf16.mxu1 (!%p897_p6), %vm1163_vm1, %v4209_v19 }
  0x73   : > { %s4710_s2 = scalar_select %p989_p7, %s4426_s18, 1 }
  0x75   : > { %s3814_s7 = sshll.u32 %s4710_s2, 5  ;;  %1092 = vperm.xlu1 %4207, %v1026_v5   ;;  %1087 = vperm.xlu0 %4206, %v1025_v6  }
  0x76   : > { %s4716_s4 = scalar_lea.vmem %s5361_s9, %s3814_s7  ;;  %s5364_s7 = sld [smem:[#allocation28_spill]] }
  0x77   : > { %v4723_v9 = vld [vmem:[%s4716_s4] sm:$0xff]  ;;  %v4726_v10 = vld [vmem:[%s4716_s4 + $0x8] sm:$0xff]  ;;  %v4735_v15 = vld [vmem:[%s4716_s4 + $0x10] sm:$0xff] }
  0x78   : > { %v1032_v13 = vsel %vm1031_vm0, %v4723_v9, 0.0  ;;  %v1033_v14 = vsel %vm1031_vm0, %v4726_v10, 0.0  ;;  %v1035_v21 = vsel %vm1031_vm0, %v4735_v15, 0.0  ;;  %v4748_v24 = vld [vmem:[%s4716_s4 + $0x18] sm:$0xff]  ;;  %s1001_s4 = sld [smem:[#allocation3 + %s4426_s18]] }
  0x79   : > { %1116 = vperm.xlu1 %4207, %v1030_v7   ;;  %1111 = vperm.xlu0 %4206, %v1029_v8   ;;  %v1034_v20 = vadd.f32 %v1033_v14, %v1032_v13  ;;  %v1037_v26 = vsel %vm1031_vm0, %v4748_v24, 0.0 }
  0x7b   : > { %v1036_v25 = vadd.f32 %v1035_v21, %v1034_v20 }
  0x7d   : > { %1140 = vperm.xlu1 %4207, %v1130_v11   ;;  %1135 = vperm.xlu0 %4206, %v1129_v12   ;;  %v1038_v29 = vadd.f32 %v1037_v26, %v1036_v25  ;;  %v4471_v25 = vmov 0.0   ;;  %v4212_v26 = vld [vmem:[%s5358_s6] sm:$0xff]  }
  0x7f   : > { %v1039_v30 = vrot.slane %v1038_v29, 4 }
  0x81   : > { %1150 = vperm.xlu1 %4207, %v1132_v16   ;;  %1145 = vperm.xlu0 %4206, %v1131_v17   ;;  %v1040_v31 = vadd.f32 %v1039_v30, %v1038_v29 }
  0x83   : > { %v1041_v32 = vrot.slane %v1040_v31, 2 }
  0x85   : > { %1234 = vperm.xlu1 %4207, %v1224_v22   ;;  %1229 = vperm.xlu0 %4206, %v1223_v23   ;;  %v1042_v33 = vadd.f32 %v1041_v32, %v1040_v31  ;;  %v4210_v22 = vld [vmem:[%s5354_s14 + $0x8] sm:$0xff]  }
  0x86   : > { %v4211_v23 = vld [vmem:[%s5349_s24 + $0x8] sm:$0xff]  }
  0x87   : > { %v1043_v34 = vrot.slane %v1042_v33, 1 }
  0x89   : > { %1244 = vperm.xlu1 %4207, %v1226_v27   ;;  %1239 = vperm.xlu0 %4206, %v1225_v28   ;;  %v1044_v35 = vadd.f32 %v1043_v34, %v1042_v33  ;;  %v4213_v27 = vld [vmem:[%s5358_s6 + $0x8] sm:$0xff]  }
  0x8b   : > { %v1046_v36 = vmul.f32 0.03125, %v1044_v35 }
  0x8d   : > { %v1047_v37 = vsub.f32 %v4723_v9, %v1046_v36  ;;  %v1048_v38 = vsub.f32 %v4726_v10, %v1046_v36  ;;  %v1049_v39 = vsub.f32 %v4735_v15, %v1046_v36  ;;  %v1050_v42 = vsub.f32 %v4748_v24, %v1046_v36 }
  0x8f   : > { %v1051_v40 = vmul.f32 %v1047_v37, %v1047_v37  ;;  %v1052_v41 = vmul.f32 %v1048_v38, %v1048_v38  ;;  %v1053_v43 = vmul.f32 %v1049_v39, %v1049_v39  ;;  %v1054_v47 = vmul.f32 %v1050_v42, %v1050_v42 }
  0x91   : > { %v1055_v44 = vsel %vm1031_vm0, %v1051_v40, 0.0  ;;  %v1056_v45 = vsel %vm1031_vm0, %v1052_v41, 0.0  ;;  %v1058_v48 = vsel %vm1031_vm0, %v1053_v43, 0.0  ;;  %v1060_v50 = vsel %vm1031_vm0, %v1054_v47, 0.0 }
  0x92   : > { %v1057_v46 = vadd.f32 %v1056_v45, %v1055_v44 }
  0x94   : > { %v1059_v49 = vadd.f32 %v1058_v48, %v1057_v46 }
  0x96   : > { %v1061_v51 = vadd.f32 %v1060_v50, %v1059_v49 }
  0x98   : > { %v1062_v52 = vrot.slane %v1061_v51, 4 }
  0x9a   : > { %v1063_v53 = vadd.f32 %v1062_v52, %v1061_v51 }
  0x9c   : > { %v1064_v54 = vrot.slane %v1063_v53, 2 }
  0x9e   : > { %v1065_v55 = vadd.f32 %v1064_v54, %v1063_v53 }
  0xa0   : > { %v1066_v56 = vrot.slane %v1065_v55, 1 }
  0xa2   : > { %v1067_v57 = vadd.f32 %v1066_v56, %v1065_v55 }
  0xa4   : > { %v1068_v58 = vmul.f32 0.03125, %v1067_v57 }
  0xa6   : > { %v1069_v59 = vadd.f32 1e-12, %v1068_v58 }
  0xa8   : > { %4232 = vrsqrt.f32 %v1069_v59 }
  0xb2   : > { %v4233_v60 = vpop.eup %4232 }
  0xb3   : > { %v1071_v61 = vmul.f32 %v4233_v60, %v1047_v37  ;;  %v1072_v0 = vmul.f32 %v4233_v60, %v1048_v38  ;;  %v1074_v7 = vmul.f32 %v4233_v60, %v1050_v42  ;;  %v1073_v8 = vmul.f32 %v4233_v60, %v1049_v39 }
  0xec   : > { %v1102_v62 = vpop.permute.xlu1 %1101  ;;  %v1078_v63 = vpop.permute.xlu0 %1077 }
  0xed   : > { %v1095_v1 = vmul.f32 %v1078_v63, %v1071_v61 }
  0xef   : > { %v1119_v5 = vadd.f32 %v1102_v62, %v1095_v1 }
  0xf0   : > { %v1107_v2 = vpop.permute.xlu1 %1106  ;;  %v1083_v3 = vpop.permute.xlu0 %1082 }
  0xf1   : > { %v1096_v4 = vmul.f32 %v1083_v3, %v1072_v0 }
  0xf3   : > { %v1120_v6 = vadd.f32 %v1107_v2, %v1096_v4 }
  0xf4   : > { %v1093_v11 = vpop.permute.xlu1 %1092  ;;  %v1088_v12 = vpop.permute.xlu0 %1087 }
  0xf5   : > { %v1127_v13 = vpack.c.bf16 %v1120_v6, %v1119_v5  ;;  %v1098_v14 = vmul.f32 %v1093_v11, %v1074_v7  ;;  %v1097_v16 = vmul.f32 %v1088_v12, %v1073_v8 }
  0xf7   : > { %3918 = vmatprep.subr.bf16.mxu0 %v1127_v13  ;;  %3926 = vmatprep.subr.bf16.mxu1 %v1127_v13 }
  0xf8   : > { %v1117_v17 = vpop.permute.xlu1 %1116  ;;  %v1112_v18 = vpop.permute.xlu0 %1111  ;;  %3919 = vmatpush3.bf16.msra.mxu0 %v1127_v13  ;;  %3927 = vmatpush3.bf16.msra.mxu1 %v1127_v13 }
  0xf9   : > { %v1122_v19 = vadd.f32 %v1117_v17, %v1098_v14  ;;  %v1121_v20 = vadd.f32 %v1112_v18, %v1097_v16  ;;  %v1003_v14 = vlaneseq  ;;  %v1010_v18 = vstv %s1001_s4  ;;  %s4866_s4 = sand.u32 1, %s4418_s0  }
  0xfa   : > { %s5301_s26 = sshll.u32 %s4866_s4, 4 }
  0xfb   : > { %v1128_v21 = vpack.c.bf16 %v1122_v19, %v1121_v20  ;;  %v1004_v16 = vshrl.u32 %v1003_v14, 7  ;;  %v4805_v17 = vand.u32 127, %v1003_v14  ;;  %v1954_v14 = vld [vmem:[%s4566_s27 + $0x18] sm:$0xff]  ;;  %v2044_v19 = vld [vmem:[%s4511_s25] sm:$0xff]  ;;  %s4874_s6 = scalar_lea.vmem [#allocation7], %s5301_s26  ;;  %s5365_s26 = sld [smem:[#allocation24_spill]] }
  0xfc   : > { %v1141_v28 = vpop.permute.xlu1 %1140  ;;  %v1136_v29 = vpop.permute.xlu0 %1135 }
  0xfd   : > { %3920 = vmatprep.subr.bf16.mxu0 %v1128_v21  ;;  %3928 = vmatprep.subr.bf16.mxu1 %v1128_v21  ;;  %vm1009_vm4 = vcmp.le.s32.totalorder %v4805_v17, %v1004_v16  ;;  %vm1011_vm5 = vcmp.lt.s32.totalorder %v4805_v17, %v1010_v18  ;;  %v1953_v16 = vld [vmem:[%s4566_s27 + $0x10] sm:$0xff]  ;;  %v2045_v18 = vld [vmem:[%s4511_s25 + $0x8] sm:$0xff] }
  0xfe   : > { %3921 = vmatpush3.bf16.msra.mxu0 %v1128_v21  ;;  %3929 = vmatpush3.bf16.msra.mxu1 %v1128_v21  ;;  %vm4809_vm6 = vmand %vm1009_vm4, %vm1011_vm5 }
  0xff   : > { %3934 = vmatprep.subr.bf16.mxu0 %v1127_v13  ;;  %3942 = vmatprep.subr.bf16.mxu1 %v4471_v25 }
 0x100   : > { %v1151_v30 = vpop.permute.xlu1 %1150  ;;  %v1146_v31 = vpop.permute.xlu0 %1145 }
 0x101   : > { %3923 = vmatmul.mubr.msk.bf16.vlgmr.msra.gmra.mrb[0].mxu0 %vm1163_vm1, %v4210_v22  ;;  %3931 = vmatmul.mubr.msk.bf16.vlgmr.msra.gmra.mrb[0].mxu1 %vm1163_vm1, %v4211_v23 }
 0x102   : > { %3935 = vmatpush3.bf16.msra.mxu0 %v1127_v13  ;;  %3938 = vmatprep.mubr.msk.bf16.mxu0 %vm1163_vm1, %v4212_v26 }
 0x103   : > { %3936 = vmatprep.subr.bf16.mxu0 %v1128_v21  ;;  %3944 = vmatprep.mubr.msk.bf16.mxu1 %vm4472_vm2, %v4471_v25 }
 0x104   : > { %v1235_v32 = vpop.permute.xlu1 %1234  ;;  %v1230_v33 = vpop.permute.xlu0 %1229 }
 0x106   : > { %3937 = vmatpush3.bf16.msra.mxu0 %v1128_v21 }
 0x107   : > { %3948 = vmatprep.subr.bf16.mxu0 %v4471_v25 }
 0x108   : > { %v1240_v0 = vpop.permute.xlu0 %1239  ;;  %v1245_v2 = vpop.permute.xlu1 %1244 }
 0x109   : > { %3939 = vmatmul.mubr.msk.bf16.vlgmr.msra.gmra.mrb[4].mxu0 %vm1163_vm1, %v4213_v27 }
 0x10a   : > { %3950 = vmatprep.mubr.msk.bf16.mxu0 %vm4472_vm2, %v4471_v25 }
 0x1d4   : > { %v3924_v34 = vpop.f32.mrb[0].mxu0  ;;  %v3932_v35 = vpop.f32.mrb[0].mxu1 }
 0x1d5   : > { %v1213_v36 = vadd.f32 %v3924_v34, %v1146_v31  ;;  %v1204_v37 = vpop.f32.mrb[1].mxu0  ;;  %v1297_v38 = vpop.f32.mrb[1].mxu1  ;;  %v1306_v1 = vadd.f32 %v3932_v35, %v1240_v0 }
 0x1d6   : > { %v1205_v39 = vadd.f32 %v1204_v37, %v1136_v29  ;;  %v1298_v40 = vadd.f32 %v1297_v38, %v1230_v33  ;;  %v3925_v41 = vpop.f32.mrb[2].mxu0  ;;  %v3933_v42 = vpop.f32.mrb[2].mxu1 }
 0x1d7   : > { %v1207_v43 = vpop.f32.mrb[3].mxu0  ;;  %v1300_v44 = vpop.f32.mrb[3].mxu1  ;;  %v1407_v49 = vmul.f32 0.35355338, %v1213_v36  ;;  %v1216_v50 = vadd.f32 %v3925_v41, %v1151_v30  ;;  %v1309_v3 = vadd.f32 %v3933_v42, %v1245_v2  ;;  %v3822_v4 = vpack.c.bf16 %v1306_v1, %v1306_v1 }
 0x1d8   : > { %v1405_v45 = vmul.f32 0.35355338, %v1205_v39  ;;  %v3820_v46 = vpack.c.bf16 %v1298_v40, %v1298_v40  ;;  %v1208_v47 = vadd.f32 %v1207_v43, %v1141_v28  ;;  %v1301_v48 = vadd.f32 %v1300_v44, %v1235_v32 }
 0x1d9   : > { %v3818_v57 = vpack.c.bf16 %v1407_v49, %v1407_v49  ;;  %v1408_v58 = vmul.f32 0.35355338, %v1216_v50  ;;  %v3823_v5 = vpack.c.bf16 %v1309_v3, %v1309_v3  ;;  %v1610_v7 = vsel %vm1516_vm3, %v3822_v4, 0 }
 0x1da   : > { %v3816_v51 = vpack.c.bf16 %v1405_v45, %v1405_v45  ;;  %v1518_v52 = vsel %vm1516_vm3, %v3820_v46, 0  ;;  %v1406_v53 = vmul.f32 0.35355338, %v1208_v47  ;;  %v3821_v54 = vpack.c.bf16 %v1301_v48, %v1301_v48  ;;  %v1316_v46 = vld [vmem:[%s5356_s12] sm:$0xff] }
 0x1db   : > { %3943 = vmatpush3.bf16.msra.mxu1 %v1518_v52  ;;  %v3819_v59 = vpack.c.bf16 %v1408_v58, %v1408_v58  ;;  %v1656_v11 = vsel %vm1516_vm3, %v3823_v5, 0 }
 0x1dc   : > { %v3817_v55 = vpack.c.bf16 %v1406_v53, %v1406_v53  ;;  %v1564_v56 = vsel %vm1516_vm3, %v3821_v54, 0  ;;  %1425 = vxpose.xlu0.c.b16.start.end [1/1] (short) (narrow) %v3816_v51, 16  ;;  %3954 = vmatprep.subr.bf16.mxu1 %v4471_v25  ;;  %v4780_v60 = vpop.f32.mrb[4].mxu0 }
 0x1dd   : > { %3949 = vmatpush3.bf16.msra.mxu0 %v1564_v56  ;;  %v4782_v61 = vpop.f32.mrb[5].mxu0 }
 0x1de   : > { %1441 = vxpose.xlu1.c.b16.start.end [1/1] (short) (narrow) %v3817_v55, 16  ;;  %3960 = vmatprep.subr.bf16.mxu0 %v4471_v25  ;;  %v4784_v62 = vpop.f32.mrb[6].mxu0 }
 0x1df   : > { %v4786_v63 = vpop.f32.mrb[7].mxu0 }
 0x1e0   : > { %1457 = vxpose.xlu0.c.b16.start.end [1/1] (short) (narrow) %v3818_v57, 16 }
 0x1e4   : > { %1473 = vxpose.xlu0.c.b16.start.end [1/1] (short) (narrow) %v3819_v59, 16 }
 0x242   : > { %v1433_v6 = vpop.trf.xlu0 }
 0x243   : > { %3945 = vmatmul.mubr.msk.bf16.vlgmr.msra.gmra.mrb[4].mxu1 %vm1031_vm0, %v1433_v6 }
 0x244   : > { %3955 = vmatpush3.bf16.msra.mxu1 %v1610_v7  ;;  %v1449_v8 = vpop.trf.xlu1  ;;  %3956 = vmatprep.mubr.msk.bf16.mxu1 %vm4472_vm2, %v4471_v25  ;;  %v1318_v7 = vld [vmem:[%s5356_s12 + $0x10] sm:$0xff] }
 0x245   : > { %3951 = vmatmul.mubr.msk.bf16.vlgmr.msra.gmra.mrb[8].mxu0 %vm1031_vm0, %v1449_v8  ;;  %3966 = vmatprep.subr.bf16.mxu1 %v4471_v25  ;;  %v1319_v8 = vld [vmem:[%s5356_s12 + $0x18] sm:$0xff] }
 0x246   : > { %3961 = vmatpush3.bf16.msra.mxu0 %v1656_v11  ;;  %v1465_v12 = vpop.trf.xlu0  ;;  %3962 = vmatprep.mubr.msk.bf16.mxu0 %vm4472_vm2, %v4471_v25  ;;  %v1317_v11 = vld [vmem:[%s5356_s12 + $0x8] sm:$0xff]  ;;  %s5367_s12 = sld [smem:[#allocation27_spill]] }
 0x247   : > { %3972 = vmatprep.subr.bf16.mxu0 %v4471_v25 }
 0x24a   : > { %v1481_v13 = vpop.trf.xlu0 }
 0x24b   : > { %3957 = vmatmul.mubr.msk.bf16.vlgmr.msra.gmra.mrb[8].mxu1 %vm1031_vm0, %v1465_v12  ;;  %v1952_v12 = vld [vmem:[%s4566_s27 + $0x8] sm:$0xff] }
 0x24c   : > { %3968 = vmatprep.mubr.msk.bf16.mxu1 %vm4472_vm2, %v4471_v25 }
 0x24d   : > { %3963 = vmatmul.mubr.msk.bf16.vlgmr.msra.gmra.mrb[12].mxu0 %vm1031_vm0, %v1481_v13  ;;  %v1951_v13 = vld [vmem:[%s4566_s27] sm:$0xff] }
 0x24e   : > { %3974 = vmatprep.mubr.msk.bf16.mxu0 %vm4472_vm2, %v4471_v25 }
 0x316   : > { %v1554_v20 = vpop.f32.mrb[4].mxu1 }
 0x317   : > { %v1700_v21 = vsel %vm4809_vm6, %v1554_v20, -3.4028235e+38  ;;  %v3946_v22 = vpop.f32.mrb[5].mxu1  ;;  %v2049_v20 = vld [vmem:[%s4516_s29 + $0x8] sm:$0xff] }
 0x318   : > { %v1557_v23 = vpop.f32.mrb[6].mxu1  ;;  %v1600_v26 = vpop.f32.mrb[8].mxu0  ;;  %v1704_v27 = vsel %vm1031_vm0, %v1700_v21, -inf  ;;  %v2047_v22 = vld [vmem:[%s4511_s25 + $0x18] sm:$0xff] }
 0x319   : > { %v1701_v28 = vsel %vm4809_vm6, %v1600_v26, -3.4028235e+38  ;;  %v3952_v29 = vpop.f32.mrb[9].mxu0  ;;  %1705 = vmax.xlane.f32.xlu1 %v1704_v27  ;;  %v3947_v30 = vpop.f32.mrb[7].mxu1  ;;  %v2046_v23 = vld [vmem:[%s4511_s25 + $0x10] sm:$0xff]  ;;  %v2051_v26 = vld [vmem:[%s4516_s29 + $0x18] sm:$0xff] }
 0x31a   : > { %v1603_v31 = vpop.f32.mrb[10].mxu0  ;;  %v1707_v32 = vsel %vm1031_vm0, %v1701_v28, -inf  ;;  %v2050_v27 = vld [vmem:[%s4516_s29 + $0x10] sm:$0xff]  ;;  %v2148_v29 = vld [vmem:[%s5357_s8] sm:$0xff]  ;;  %v2151_v30 = vld [vmem:[%s5357_s8 + $0x18] sm:$0xff] }
 0x31b   : > { %v3953_v33 = vpop.f32.mrb[11].mxu0  ;;  %1708 = vmax.xlane.f32.xlu0 %v1707_v32  ;;  %v2150_v31 = vld [vmem:[%s5357_s8 + $0x10] sm:$0xff]  ;;  %v2242_v32 = vld [vmem:[%s5364_s7 + $0x8] sm:$0xff] }
 0x31c   : > { %v2241_v33 = vld [vmem:[%s5364_s7] sm:$0xff] }
 0x31e   : > { %v1646_v34 = vpop.f32.mrb[8].mxu1 }
 0x31f   : > { %v1702_v35 = vsel %vm4809_vm6, %v1646_v34, -3.4028235e+38  ;;  %v3958_v36 = vpop.f32.mrb[9].mxu1  ;;  %v2244_v34 = vld [vmem:[%s5364_s7 + $0x18] sm:$0xff] }
 0x320   : > { %v1649_v37 = vpop.f32.mrb[10].mxu1  ;;  %v1692_v38 = vpop.f32.mrb[12].mxu0  ;;  %v1710_v39 = vsel %vm1031_vm0, %v1702_v35, -inf }
 0x321   : > { %v1703_v40 = vsel %vm4809_vm6, %v1692_v38, -3.4028235e+38  ;;  %1711 = vmax.xlane.f32.xlu1 %v1710_v39  ;;  %v3959_v41 = vpop.f32.mrb[11].mxu1  ;;  %v3964_v42 = vpop.f32.mrb[13].mxu0 }
 0x322   : > { %v1695_v43 = vpop.f32.mrb[14].mxu0  ;;  %v1713_v44 = vsel %vm1031_vm0, %v1703_v40, -inf }
 0x323   : > { %1714 = vmax.xlane.f32.xlu0 %v1713_v44  ;;  %v3965_v45 = vpop.f32.mrb[15].mxu0 }
 0x332   : > { %1322 = vperm.xlu1 %4207, %v1316_v46  }
 0x3a6   : > { %v1706_v47 = vpop.xlane.xlu1 %1705 }
 0x3a7   : > { %v1716_v48 = vsub.f32 %v1700_v21, %v1706_v47  ;;  %v2048_v21 = vld [vmem:[%s4516_s29] sm:$0xff] }
 0x3a8   : > { %v1709_v49 = vpop.xlane.xlu0 %1708 }
 0x3a9   : > { %v1720_v50 = vmul.f32 1.442695, %v1716_v48  ;;  %v1717_v51 = vsub.f32 %v1701_v28, %v1709_v49  ;;  %v2149_v28 = vld [vmem:[%s5357_s8 + $0x8] sm:$0xff]  ;;  %s3815_s8 = sshll.u32 %s4710_s2, 4  ;;  %s1002_s2 = sld [smem:[#allocation4 + %s4426_s18]] }
 0x3ab   : > { %4234 = vpow2.f32 %v1720_v50  ;;  %v1722_v52 = vmul.f32 1.442695, %v1717_v51 }
 0x3ad   : > { %4236 = vpow2.f32 %v1722_v52 }
 0x3ae   : > { %v1712_v53 = vpop.xlane.xlu1 %1711 }
 0x3af   : > { %v1718_v54 = vsub.f32 %v1702_v35, %v1712_v53  ;;  %v2243_v35 = vld [vmem:[%s5364_s7 + $0x10] sm:$0xff]  ;;  %s5366_s7 = sld [smem:[#allocation14_spill]] }
 0x3b0   : > { %v1715_v55 = vpop.xlane.xlu0 %1714 }
 0x3b1   : > { %v1724_v56 = vmul.f32 1.442695, %v1718_v54  ;;  %v1719_v57 = vsub.f32 %v1703_v40, %v1715_v55 }
 0x3b2   : > { %v1323_v36 = vpop.permute.xlu1 %1322 }
 0x3b3   : > { %4238 = vpow2.f32 %v1724_v56  ;;  %v1726_v58 = vmul.f32 1.442695, %v1719_v57  ;;  %v1391_v48 = vadd.f32 %v4782_v61, %v1323_v36 }
 0x3b5   : > { %v4826_v59 = vpop.eup %4234  ;;  %4240 = vpow2.f32 %v1726_v58  ;;  %v3824_v61 = vpack.c.bf16 %v1391_v48, %v1391_v48  ;;  %s998_s9 = scalar_lea.vmem %s5366_s7, %s3815_s8  ;;  %s5368_s8 = sld [smem:[#allocation25_spill]] }
 0x3b6   : > { %v1728_v0 = vsel %vm1031_vm0, %v4826_v59, 0.0  ;;  %s5372_s7 = sld [smem:[#allocation30_spill]] }
 0x3b7   : > { %v4830_v1 = vpop.eup %4236  ;;  %1729 = vadd.xlane.f32.xlu1 %v1728_v0 }
 0x3b8   : > { %v1731_v2 = vsel %vm1031_vm0, %v4830_v1, 0.0 }
 0x3b9   : > { %1732 = vadd.xlane.f32.xlu0 %v1731_v2 }
 0x3bd   : > { %v4834_v3 = vpop.eup %4238 }
 0x3be   : > { %v1734_v4 = vsel %vm1031_vm0, %v4834_v3, 0.0 }
 0x3bf   : > { %v4838_v5 = vpop.eup %4240  ;;  %1735 = vadd.xlane.f32.xlu1 %v1734_v4 }
 0x3c0   : > { %v1737_v6 = vsel %vm1031_vm0, %v4838_v5, 0.0 }
 0x3c1   : > { %1738 = vadd.xlane.f32.xlu0 %v1737_v6  ;;  %v4214_v6 = vld [vmem:[%s5365_s26] sm:$0xff]  }
 0x3d0   : > { %1332 = vperm.xlu1 %4207, %v1318_v7  }
 0x3d4   : > { %1337 = vperm.xlu1 %4207, %v1319_v8  }
 0x3d7   : > { %1327 = vperm.xlu0 %4206, %v1317_v11  }
 0x3d8   : > { %1962 = vperm.xlu1 %4207, %v1952_v12  }
 0x3db   : > { %1957 = vperm.xlu0 %4206, %v1951_v13  }
 0x3dc   : > { %1972 = vperm.xlu1 %4207, %v1954_v14  }
 0x3df   : > { %1967 = vperm.xlu0 %4206, %v1953_v16  }
 0x3e0   : > { %2101 = vperm.xlu1 %4207, %v2045_v18  }
 0x3e3   : > { %2096 = vperm.xlu0 %4206, %v2044_v19  }
 0x3e4   : > { %2125 = vperm.xlu1 %4207, %v2049_v20  }
 0x3e7   : > { %2120 = vperm.xlu0 %4206, %v2048_v21  }
 0x3e8   : > { %2111 = vperm.xlu1 %4207, %v2047_v22  }
 0x3eb   : > { %2106 = vperm.xlu0 %4206, %v2046_v23  }
 0x3ec   : > { %2135 = vperm.xlu1 %4207, %v2051_v26  }
 0x3ef   : > { %2130 = vperm.xlu0 %4206, %v2050_v27   ;;  %v4907_v27 = vld [vmem:[%s998_s9] sm:$0xff]  }
 0x3f0   : > { %2159 = vperm.xlu1 %4207, %v2149_v28  }
 0x3f3   : > { %2154 = vperm.xlu0 %4206, %v2148_v29  }
 0x3f4   : > { %2169 = vperm.xlu1 %4207, %v2151_v30   ;;  %v4215_v30 = vld [vmem:[%s5365_s26 + $0x8] sm:$0xff]  }
 0x3f7   : > { %2164 = vperm.xlu0 %4206, %v2150_v31   ;;  %v4218_v31 = vld [vmem:[%s5367_s12] sm:$0xff]  }
 0x3f8   : > { %2252 = vperm.xlu1 %4207, %v2242_v32   ;;  %v4912_v32 = vld [vmem:[%s998_s9 + $0x8] sm:$0xff]   ;;  %s5369_s9 = sld [smem:[#allocation29_spill]] }
 0x3fb   : > { %2247 = vperm.xlu0 %4206, %v2241_v33   ;;  %v4219_v33 = vld [vmem:[%s5367_s12 + $0x8] sm:$0xff]   ;;  %s5376_s12 = sld [smem:[#allocation34_spill]] }
 0x3fc   : > { %2262 = vperm.xlu1 %4207, %v2244_v34   ;;  %v4220_v34 = vld [vmem:[%s5368_s8] sm:$0xff]  }
 0x3ff   : > { %2257 = vperm.xlu0 %4206, %v2243_v35  }
 0x444   : > { %v1730_v37 = vpop.xlane.xlu1 %1729 }
 0x445   : > { %4242 = vrcp.f32 %v1730_v37 }
 0x446   : > { %v1733_v38 = vpop.xlane.xlu0 %1732 }
 0x447   : > { %4244 = vrcp.f32 %v1733_v38 }
 0x44c   : > { %v1736_v39 = vpop.xlane.xlu1 %1735 }
 0x44d   : > { %4246 = vrcp.f32 %v1736_v39 }
 0x44e   : > { %v1739_v40 = vpop.xlane.xlu0 %1738 }
 0x44f   : > { %v4243_v41 = vpop.eup %4242  ;;  %4248 = vrcp.f32 %v1739_v40 }
 0x450   : > { %v1748_v42 = vmul.f32 %v4243_v41, %v4826_v59  ;;  %v1333_v52 = vpop.permute.xlu1 %1332 }
 0x451   : > { %v4245_v43 = vpop.eup %4244 }
 0x452   : > { %v1752_v44 = vpack.c.bf16 %v1748_v42, %v1748_v42  ;;  %v1749_v45 = vmul.f32 %v4245_v43, %v4830_v1  ;;  %v1399_v1 = vadd.f32 %v4780_v60, %v1333_v52 }
 0x454   : > { %v1765_v46 = vsel %vm1031_vm0, %v1752_v44, 0  ;;  %v1753_v47 = vpack.c.bf16 %v1749_v45, %v1749_v45  ;;  %1757 = vst.msk [vmem:[%s4874_s6] sm:$0xf] %vm1756_vm7, %v1752_v44  ;;  %v3826_v4 = vpack.c.bf16 %v1399_v1, %v1399_v1 }
 0x455   : > { %3967 = vmatpush3.bf16.xpose.msra.mxu1 %v1765_v46 }
 0x456   : > { %v1328_v49 = vpop.permute.xlu0 %1327  ;;  %v1811_v50 = vsel %vm1031_vm0, %v1753_v47, 0  ;;  %3978 = vmatprep.subr.bf16.mxu1 %v4471_v25  ;;  %1758 = vst.msk [vmem:[%s4874_s6 + $0x4] sm:$0xf] %vm1756_vm7, %v1753_v47 }
 0x457   : > { %v4247_v51 = vpop.eup %4246  ;;  %3973 = vmatpush3.bf16.xpose.msra.mxu0 %v1811_v50  ;;  %v1394_v53 = vadd.f32 %v4786_v63, %v1328_v49  ;;  %v1338_v63 = vpop.permute.xlu1 %1337 }
 0x458   : > { %v1750_v54 = vmul.f32 %v4247_v51, %v4834_v3  ;;  %3984 = vmatprep.subr.bf16.mxu0 %v4471_v25  ;;  %v1402_v3 = vadd.f32 %v4784_v62, %v1338_v63 }
 0x459   : > { %v4249_v55 = vpop.eup %4248  ;;  %v3825_v58 = vpack.c.bf16 %v1394_v53, %v1394_v53 }
 0x45a   : > { %v1754_v56 = vpack.c.bf16 %v1750_v54, %v1750_v54  ;;  %v1751_v57 = vmul.f32 %v4249_v55, %v4838_v5  ;;  %v3827_v5 = vpack.c.bf16 %v1402_v3, %v1402_v3  ;;  %v1958_v35 = vpop.permute.xlu0 %1957 }
 0x45b   : > { %v1963_v41 = vpop.permute.xlu1 %1962 }
 0x45c   : > { %3969 = vmatmul.mubr.msk.bf16.vlgmr.msra.gmra.mrb[12].mxu1 %vm1031_vm0, %v3824_v61  ;;  %v1857_v59 = vsel %vm1031_vm0, %v1754_v56, 0  ;;  %v1755_v0 = vpack.c.bf16 %v1751_v57, %v1751_v57  ;;  %1759 = vst.msk [vmem:[%s4874_s6 + $0x8] sm:$0xf] %vm1756_vm7, %v1754_v56 }
 0x45d   : > { %3979 = vmatpush3.bf16.xpose.msra.mxu1 %v1857_v59  ;;  %3980 = vmatprep.mubr.msk.bf16.mxu1 %vm4472_vm2, %v4471_v25 }
 0x45e   : > { %3975 = vmatmul.mubr.msk.bf16.vlgmr.msra.gmra.mrb[16].mxu0 %vm1031_vm0, %v3825_v58  ;;  %v1903_v2 = vsel %vm1031_vm0, %v1755_v0, 0  ;;  %1760 = vst.msk [vmem:[%s4874_s6 + $0xc] sm:$0xf] %vm1756_vm7, %v1755_v0  ;;  %v1968_v36 = vpop.permute.xlu0 %1967 }
 0x45f   : > { %3985 = vmatpush3.bf16.xpose.msra.mxu0 %v1903_v2  ;;  %3986 = vmatprep.mubr.msk.bf16.mxu0 %vm4472_vm2, %v4471_v25  ;;  %v1973_v45 = vpop.permute.xlu1 %1972 }
 0x462   : > { %v4926_v37 = vpop.permute.xlu0 %2096 }
 0x464   : > { %3981 = vmatmul.mubr.msk.bf16.vlgmr.msra.gmra.mrb[16].mxu1 %vm1031_vm0, %v3826_v4 }
 0x465   : > { %3994 = vmatprep.mubr.msk.bf16.mxu1 %vm1163_vm1, %v4214_v6 }
 0x466   : > { %3987 = vmatmul.mubr.msk.bf16.vlgmr.msra.gmra.mrb[20].mxu0 %vm1031_vm0, %v3827_v5  ;;  %v4928_v38 = vpop.permute.xlu0 %2120 }
 0x467   : > { %4002 = vmatprep.mubr.msk.bf16.mxu0 %vm1163_vm1, %v4220_v34 }
 0x46a   : > { %v4930_v39 = vpop.permute.xlu0 %2106 }
 0x46e   : > { %v4932_v40 = vpop.permute.xlu0 %2130 }
 0x472   : > { %v4934_v42 = vpop.permute.xlu0 %2154 }
 0x476   : > { %v4936_v49 = vpop.permute.xlu0 %2164 }
 0x52f   : > { %v1801_v60 = vpop.f32.mrb[12].mxu1 }
 0x530   : > { %v3970_v7 = vpop.f32.mrb[13].mxu1 }
 0x531   : > { %v1804_v8 = vpop.f32.mrb[14].mxu1  ;;  %v1847_v11 = vpop.f32.mrb[16].mxu0 }
 0x532   : > { %v1949_v12 = vpack.c.bf16 %v1847_v11, %v1801_v60  ;;  %v3971_v13 = vpop.f32.mrb[15].mxu1  ;;  %v3976_v14 = vpop.f32.mrb[17].mxu0 }
 0x533   : > { %v1850_v62 = vpop.f32.mrb[18].mxu0 }
 0x534   : > { %v3977_v16 = vpop.f32.mrb[19].mxu0  ;;  %3990 = vmatprep.subr.bf16.mxu1 %v1949_v12 }
 0x535   : > { %3991 = vmatpush3.bf16.msra.mxu1 %v1949_v12 }
 0x537   : > { %v1893_v18 = vpop.f32.mrb[16].mxu1 }
 0x538   : > { %v3982_v19 = vpop.f32.mrb[17].mxu1 }
 0x539   : > { %v1896_v20 = vpop.f32.mrb[18].mxu1  ;;  %v1939_v21 = vpop.f32.mrb[20].mxu0 }
 0x53a   : > { %v1950_v22 = vpack.c.bf16 %v1939_v21, %v1893_v18  ;;  %v3983_v23 = vpop.f32.mrb[19].mxu1  ;;  %v3988_v26 = vpop.f32.mrb[21].mxu0 }
 0x53b   : > { %v1942_v28 = vpop.f32.mrb[22].mxu0 }
 0x53c   : > { %v3989_v29 = vpop.f32.mrb[23].mxu0  ;;  %3992 = vmatprep.subr.bf16.mxu1 %v1950_v22 }
 0x53d   : > { %3993 = vmatpush3.bf16.msra.mxu1 %v1950_v22 }
 0x53e   : > { %4006 = vmatprep.subr.bf16.mxu1 %v4907_v27 }
 0x540   : > { %3995 = vmatmul.mubr.msk.bf16.vlgmr.msra.gmra.mrb[20].mxu1 %vm1163_vm1, %v4215_v30 }
 0x541   : > { %4007 = vmatpush3.bf16.msra.mxu1 %v4907_v27  ;;  %4010 = vmatprep.mubr.msk.bf16.mxu1 %vm1163_vm1, %v4218_v31 }
 0x542   : > { %4008 = vmatprep.subr.bf16.mxu1 %v4912_v32 }
 0x545   : > { %4009 = vmatpush3.bf16.msra.mxu1 %v4912_v32 }
 0x546   : > { %4022 = vmatprep.subr.bf16.mxu1 %v4471_v25 }
 0x548   : > { %4011 = vmatmul.mubr.msk.bf16.vlgmr.msra.gmra.mrb[24].mxu1 %vm1163_vm1, %v4219_v33 }
 0x549   : > { %4024 = vmatprep.mubr.msk.bf16.mxu1 %vm4472_vm2, %v4471_v25 }
 0x613   : > { %v3996_v43 = vpop.f32.mrb[20].mxu1 }
 0x614   : > { %v2025_v44 = vpop.f32.mrb[21].mxu1  ;;  %v2034_v46 = vadd.f32 %v3996_v43, %v1968_v36 }
 0x615   : > { %v2026_v47 = vadd.f32 %v2025_v44, %v1958_v35  ;;  %v3997_v48 = vpop.f32.mrb[22].mxu1 }
 0x616   : > { %v2028_v50 = vpop.f32.mrb[23].mxu1  ;;  %v2037_v52 = vadd.f32 %v3997_v48, %v1973_v45  ;;  %v4942_v54 = vadd.f32 %v2034_v46, %v4735_v15 }
 0x617   : > { %v4939_v51 = vadd.f32 %v2026_v47, %v4723_v9  ;;  %v2029_v53 = vadd.f32 %v2028_v50, %v1963_v41  ;;  %v2248_v9 = vpop.permute.xlu0 %2247  ;;  %v2102_v41 = vpop.permute.xlu1 %2101 }
 0x618   : > { %v4950_v56 = vadd.f32 %v2037_v52, %v4748_v24  ;;  %v2055_v15 = vsel %vm1031_vm0, %v4942_v54, 0.0 }
 0x619   : > { %v4945_v55 = vadd.f32 %v2029_v53, %v4726_v10  ;;  %v2052_v61 = vsel %vm1031_vm0, %v4939_v51, 0.0 }
 0x61a   : > { %v2057_v24 = vsel %vm1031_vm0, %v4950_v56, 0.0 }
 0x61b   : > { %v2053_v57 = vsel %vm1031_vm0, %v4945_v55, 0.0  ;;  %v4954_v58 = vpop.f32.mrb[24].mxu1  ;;  %v2126_v46 = vpop.permute.xlu1 %2125 }
 0x61c   : > { %v2054_v59 = vadd.f32 %v2053_v57, %v2052_v61  ;;  %v2327_v0 = vpop.f32.mrb[25].mxu1 }
 0x61d   : > { %v2328_v63 = vadd.f32 %v2327_v0, %v2248_v9  ;;  %v4958_v10 = vpop.f32.mrb[26].mxu1 }
 0x61e   : > { %v2056_v1 = vadd.f32 %v2055_v15, %v2054_v59  ;;  %v4960_v2 = vpop.f32.mrb[27].mxu1 }
 0x61f   : > { %v3832_v3 = vpack.c.bf16 %v2328_v63, %v2328_v63  ;;  %v2112_v50 = vpop.permute.xlu1 %2111 }
 0x620   : > { %v2058_v4 = vadd.f32 %v2057_v24, %v2056_v1 }
 0x621   : > { %v2547_v5 = vsel %vm1516_vm3, %v3832_v3, 0 }
 0x622   : > { %v2059_v6 = vrot.slane %v2058_v4, 4  ;;  %4023 = vmatpush3.bf16.msra.mxu1 %v2547_v5 }
 0x623   : > { %4034 = vmatprep.subr.bf16.mxu1 %v4471_v25  ;;  %v2136_v52 = vpop.permute.xlu1 %2135 }
 0x624   : > { %v2060_v60 = vadd.f32 %v2059_v6, %v2058_v4 }
 0x626   : > { %v2061_v7 = vrot.slane %v2060_v60, 2 }
 0x627   : > { %v2160_v24 = vpop.permute.xlu1 %2159 }
 0x628   : > { %v2062_v8 = vadd.f32 %v2061_v7, %v2060_v60 }
 0x62a   : > { %v2063_v11 = vrot.slane %v2062_v8, 1 }
 0x62c   : > { %v2064_v12 = vadd.f32 %v2063_v11, %v2062_v8  ;;  %v2170_v8 = vpop.permute.xlu1 %2169  ;;  %v4222_v11 = vld [vmem:[%s5369_s9] sm:$0xff]  }
 0x62e   : > { %v2065_v13 = vmul.f32 0.03125, %v2064_v12 }
 0x630   : > { %v2066_v14 = vsub.f32 %v4939_v51, %v2065_v13  ;;  %v2067_v62 = vsub.f32 %v4945_v55, %v2065_v13  ;;  %v2068_v16 = vsub.f32 %v4942_v54, %v2065_v13  ;;  %v2069_v18 = vsub.f32 %v4950_v56, %v2065_v13 }
 0x632   : > { %v2070_v19 = vmul.f32 %v2066_v14, %v2066_v14  ;;  %v2071_v20 = vmul.f32 %v2067_v62, %v2067_v62  ;;  %v2072_v21 = vmul.f32 %v2068_v16, %v2068_v16  ;;  %v2073_v22 = vmul.f32 %v2069_v18, %v2069_v18 }
 0x634   : > { %v2074_v23 = vsel %vm1031_vm0, %v2070_v19, 0.0  ;;  %v2075_v26 = vsel %vm1031_vm0, %v2071_v20, 0.0  ;;  %v2077_v29 = vsel %vm1031_vm0, %v2072_v21, 0.0  ;;  %v2079_v31 = vsel %vm1031_vm0, %v2073_v22, 0.0 }
 0x635   : > { %v2076_v28 = vadd.f32 %v2075_v26, %v2074_v23 }
 0x637   : > { %v2078_v30 = vadd.f32 %v2077_v29, %v2076_v28 }
 0x639   : > { %v2080_v33 = vadd.f32 %v2079_v31, %v2078_v30 }
 0x63b   : > { %v2081_v34 = vrot.slane %v2080_v33, 4 }
 0x63d   : > { %v2082_v35 = vadd.f32 %v2081_v34, %v2080_v33  ;;  %v2258_v34 = vpop.permute.xlu0 %2257 }
 0x63f   : > { %v2083_v36 = vrot.slane %v2082_v35, 2 }
 0x641   : > { %v2084_v43 = vadd.f32 %v2083_v36, %v2082_v35  ;;  %v2336_v35 = vadd.f32 %v4954_v58, %v2258_v34 }
 0x643   : > { %v2085_v44 = vrot.slane %v2084_v43, 1 }
 0x645   : > { %v2086_v45 = vadd.f32 %v2085_v44, %v2084_v43  ;;  %v3834_v43 = vpack.c.bf16 %v2336_v35, %v2336_v35 }
 0x647   : > { %v2087_v47 = vmul.f32 0.03125, %v2086_v45 }
 0x649   : > { %v2088_v48 = vadd.f32 1e-12, %v2087_v47 }
 0x64b   : > { %4250 = vrsqrt.f32 %v2088_v48 }
 0x655   : > { %v4251_v53 = vpop.eup %4250 }
 0x656   : > { %v2091_v61 = vmul.f32 %v4251_v53, %v2067_v62  ;;  %v2090_v57 = vmul.f32 %v4251_v53, %v2066_v14  ;;  %v2092_v9 = vmul.f32 %v4251_v53, %v2068_v16  ;;  %v2093_v59 = vmul.f32 %v4251_v53, %v2069_v18 }
 0x658   : > { %v2114_v0 = vmul.f32 %v4926_v37, %v2090_v57  ;;  %v2115_v15 = vmul.f32 %v2102_v41, %v2091_v61  ;;  %v2116_v63 = vmul.f32 %v4930_v39, %v2092_v9  ;;  %v2117_v1 = vmul.f32 %v2112_v50, %v2093_v59  ;;  %v4221_v37 = vld [vmem:[%s5368_s8 + $0x8] sm:$0xff]   ;;  %v2253_v39 = vpop.permute.xlu1 %2252  ;;  %s5374_s8 = sld [smem:[#allocation17_spill]] }
 0x659   : > { %v2331_v12 = vadd.f32 %v4960_v2, %v2253_v39  ;;  %v1013_v50 = vstv %s1002_s2  ;;  %s5373_s2 = sld [smem:[#allocation32_spill]] }
 0x65a   : > { %v2138_v3 = vadd.f32 %v4928_v38, %v2114_v0  ;;  %v2139_v4 = vadd.f32 %v2126_v46, %v2115_v15  ;;  %v2140_v5 = vadd.f32 %v4932_v40, %v2116_v63  ;;  %v2141_v6 = vadd.f32 %v2136_v52, %v2117_v1  ;;  %v4223_v40 = vld [vmem:[%s5369_s9 + $0x8] sm:$0xff]   ;;  %s5375_s9 = sld [smem:[#allocation18_spill]] }
 0x65b   : > { %v3833_v38 = vpack.c.bf16 %v2331_v12, %v2331_v12  ;;  %v2639_v46 = vsel %vm1516_vm3, %v3834_v43, 0  ;;  %vm5024_vm8 = vcmp.lt.s32.totalorder %v4805_v17, %v1013_v50  ;;  %v2348_v43 = vld [vmem:[%s5372_s7 + $0x10] sm:$0xff] }
 0x65c   : > { %v2146_v60 = vpack.c.bf16 %v2139_v4, %v2138_v3  ;;  %v2147_v7 = vpack.c.bf16 %v2141_v6, %v2140_v5  ;;  %v2263_v36 = vpop.permute.xlu1 %2262 }
 0x65d   : > { %v2593_v13 = vsel %vm1516_vm3, %v3833_v38, 0  ;;  %v2339_v41 = vadd.f32 %v4958_v10, %v2263_v36 }
 0x65e   : > { %3998 = vmatprep.subr.bf16.mxu0 %v2146_v60  ;;  %v3074_v50 = vld [vmem:[%s5374_s8] sm:$0xff] }
 0x65f   : > { %3999 = vmatpush3.bf16.msra.mxu0 %v2146_v60  ;;  %v3835_v44 = vpack.c.bf16 %v2339_v41, %v2339_v41 }
 0x660   : > { %4000 = vmatprep.subr.bf16.mxu0 %v2147_v7  ;;  %v3079_v52 = vld [vmem:[%s5375_s9 + $0x8] sm:$0xff] }
 0x661   : > { %v2685_v48 = vsel %vm1516_vm3, %v3835_v44, 0  ;;  %v2349_v44 = vld [vmem:[%s5372_s7 + $0x18] sm:$0xff] }
 0x663   : > { %4001 = vmatpush3.bf16.msra.mxu0 %v2147_v7 }
 0x664   : > { %4014 = vmatprep.subr.bf16.mxu0 %v4907_v27 }
 0x666   : > { %4003 = vmatmul.mubr.msk.bf16.vlgmr.msra.gmra.mrb[24].mxu0 %vm1163_vm1, %v4221_v37 }
 0x667   : > { %4015 = vmatpush3.bf16.msra.mxu0 %v4907_v27  ;;  %4018 = vmatprep.mubr.msk.bf16.mxu0 %vm1163_vm1, %v4222_v11 }
 0x668   : > { %4016 = vmatprep.subr.bf16.mxu0 %v4912_v32 }
 0x66b   : > { %4017 = vmatpush3.bf16.msra.mxu0 %v4912_v32 }
 0x66c   : > { %4028 = vmatprep.subr.bf16.mxu0 %v4471_v25 }
 0x66e   : > { %4019 = vmatmul.mubr.msk.bf16.vlgmr.msra.gmra.mrb[28].mxu0 %vm1163_vm1, %v4223_v40 }
 0x66f   : > { %4029 = vmatpush3.bf16.msra.mxu0 %v2593_v13  ;;  %4030 = vmatprep.mubr.msk.bf16.mxu0 %vm4472_vm2, %v4471_v25  ;;  %v2346_v13 = vld [vmem:[%s5372_s7] sm:$0xff] }
 0x670   : > { %4040 = vmatprep.subr.bf16.mxu0 %v4471_v25 }
 0x739   : > { %v4004_v27 = vpop.f32.mrb[24].mxu0 }
 0x73a   : > { %v2222_v2 = vpop.f32.mrb[25].mxu0  ;;  %v2231_v14 = vadd.f32 %v4004_v27, %v4936_v49 }
 0x73b   : > { %v2223_v62 = vadd.f32 %v2222_v2, %v4934_v42  ;;  %v4005_v16 = vpop.f32.mrb[26].mxu0 }
 0x73c   : > { %v2225_v32 = vpop.f32.mrb[27].mxu0  ;;  %v2437_v20 = vmul.f32 0.35355338, %v2231_v14  ;;  %v2234_v22 = vadd.f32 %v4005_v16, %v2170_v8 }
 0x73d   : > { %v2435_v18 = vmul.f32 0.35355338, %v2223_v62  ;;  %v2226_v19 = vadd.f32 %v2225_v32, %v2160_v24 }
 0x73e   : > { %v3830_v30 = vpack.c.bf16 %v2437_v20, %v2437_v20  ;;  %v2438_v31 = vmul.f32 0.35355338, %v2234_v22 }
 0x73f   : > { %v3828_v21 = vpack.c.bf16 %v2435_v18, %v2435_v18  ;;  %v2436_v23 = vmul.f32 0.35355338, %v2226_v19 }
 0x740   : > { %v3831_v33 = vpack.c.bf16 %v2438_v31, %v2438_v31 }
 0x741   : > { %v3829_v26 = vpack.c.bf16 %v2436_v23, %v2436_v23  ;;  %2455 = vxpose.xlu0.c.b16.start.end [1/1] (short) (narrow) %v3828_v21, 16  ;;  %v4996_v28 = vpop.f32.mrb[28].mxu0 }
 0x742   : > { %v4998_v29 = vpop.f32.mrb[29].mxu0 }
 0x743   : > { %2471 = vxpose.xlu1.c.b16.start.end [1/1] (short) (narrow) %v3829_v26, 16  ;;  %v5000_v49 = vpop.f32.mrb[30].mxu0 }
 0x744   : > { %v5002_v42 = vpop.f32.mrb[31].mxu0 }
 0x745   : > { %2487 = vxpose.xlu0.c.b16.start.end [1/1] (short) (narrow) %v3830_v30, 16 }
 0x749   : > { %2503 = vxpose.xlu0.c.b16.start.end [1/1] (short) (narrow) %v3831_v33, 16 }
 0x7a7   : > { %v2463_v45 = vpop.trf.xlu0 }
 0x7a8   : > { %4025 = vmatmul.mubr.msk.bf16.vlgmr.msra.gmra.mrb[28].mxu1 %vm1031_vm0, %v2463_v45  ;;  %v2347_v45 = vld [vmem:[%s5372_s7 + $0x8] sm:$0xff] }
 0x7a9   : > { %4035 = vmatpush3.bf16.msra.mxu1 %v2639_v46  ;;  %v2479_v47 = vpop.trf.xlu1  ;;  %4036 = vmatprep.mubr.msk.bf16.mxu1 %vm4472_vm2, %v4471_v25  ;;  %v2982_v46 = vld [vmem:[%s5373_s2 + $0x8] sm:$0xff] }
 0x7aa   : > { %4031 = vmatmul.mubr.msk.bf16.vlgmr.msra.gmra.mrb[32].mxu0 %vm1031_vm0, %v2479_v47  ;;  %4046 = vmatprep.subr.bf16.mxu1 %v4471_v25  ;;  %v2981_v47 = vld [vmem:[%s5373_s2] sm:$0xff] }
 0x7ab   : > { %4041 = vmatpush3.bf16.msra.mxu0 %v2685_v48  ;;  %v2495_v58 = vpop.trf.xlu0  ;;  %4042 = vmatprep.mubr.msk.bf16.mxu0 %vm4472_vm2, %v4471_v25  ;;  %v2984_v48 = vld [vmem:[%s5373_s2 + $0x18] sm:$0xff] }
 0x7ac   : > { %4052 = vmatprep.subr.bf16.mxu0 %v4471_v25 }
 0x7af   : > { %v2511_v10 = vpop.trf.xlu0 }
 0x7b0   : > { %4037 = vmatmul.mubr.msk.bf16.vlgmr.msra.gmra.mrb[32].mxu1 %vm1031_vm0, %v2495_v58  ;;  %v2983_v58 = vld [vmem:[%s5373_s2 + $0x10] sm:$0xff]  ;;  %s5377_s2 = sshll.u32 %s4866_s4, 4 }
 0x7b1   : > { %4048 = vmatprep.mubr.msk.bf16.mxu1 %vm4472_vm2, %v4471_v25  ;;  %s5089_s7 = scalar_lea.vmem [#allocation9], %s5377_s2  ;;  %s5378_s2 = sld [smem:[#allocation31_spill]] }
 0x7b2   : > { %4043 = vmatmul.mubr.msk.bf16.vlgmr.msra.gmra.mrb[36].mxu0 %vm1031_vm0, %v2511_v10  ;;  %v3075_v10 = vld [vmem:[%s5374_s8 + $0x8] sm:$0xff] }
 0x7b3   : > { %4054 = vmatprep.mubr.msk.bf16.mxu0 %vm4472_vm2, %v4471_v25 }
 0x87b   : > { %v2583_v53 = vpop.f32.mrb[28].mxu1 }
 0x87c   : > { %v2729_v61 = vsel %vm5024_vm8, %v2583_v53, -3.4028235e+38  ;;  %v4026_v57 = vpop.f32.mrb[29].mxu1  ;;  %v3078_v53 = vld [vmem:[%s5375_s9] sm:$0xff] }
 0x87d   : > { %v2586_v9 = vpop.f32.mrb[30].mxu1  ;;  %v2629_v59 = vpop.f32.mrb[32].mxu0  ;;  %v2734_v0 = vsel %vm2733_vm9, %v2729_v61, -inf  ;;  %v3076_v57 = vld [vmem:[%s5374_s8 + $0x10] sm:$0xff] }
 0x87e   : > { %v2730_v15 = vsel %vm5024_vm8, %v2629_v59, -3.4028235e+38  ;;  %v4032_v63 = vpop.f32.mrb[33].mxu0  ;;  %2735 = vmax.xlane.f32.xlu1 %v2734_v0  ;;  %v4027_v1 = vpop.f32.mrb[31].mxu1  ;;  %v3081_v9 = vld [vmem:[%s5375_s9 + $0x18] sm:$0xff]  ;;  %v3080_v59 = vld [vmem:[%s5375_s9 + $0x10] sm:$0xff] }
 0x87f   : > { %v2632_v17 = vpop.f32.mrb[34].mxu0  ;;  %v2737_v24 = vsel %vm2733_vm9, %v2730_v15, -inf  ;;  %v3183_v0 = vld [vmem:[%s5376_s12 + $0x8] sm:$0xff]  ;;  %v3185_v63 = vld [vmem:[%s5376_s12 + $0x18] sm:$0xff]  ;;  %v3184_v1 = vld [vmem:[%s5376_s12 + $0x10] sm:$0xff]  ;;  %s5381_s9 = sadd.s32 4294967295, %s4434_s22  }
 0x880   : > { %v4033_v3 = vpop.f32.mrb[35].mxu0  ;;  %2738 = vmax.xlane.f32.xlu0 %v2737_v24  ;;  %v3187_v17 = vld [vmem:[%s5376_s12 + $0x28] sm:$0xff]  ;;  %v3186_v24 = vld [vmem:[%s5376_s12 + $0x20] sm:$0xff] }
 0x881   : > { %v3189_v3 = vld [vmem:[%s5376_s12 + $0x38] sm:$0xff] }
 0x883   : > { %v2675_v4 = vpop.f32.mrb[32].mxu1 }
 0x884   : > { %v2731_v5 = vsel %vm5024_vm8, %v2675_v4, -3.4028235e+38  ;;  %v4038_v6 = vpop.f32.mrb[33].mxu1  ;;  %v3188_v4 = vld [vmem:[%s5376_s12 + $0x30] sm:$0xff] }
 0x885   : > { %v2678_v60 = vpop.f32.mrb[34].mxu1  ;;  %v2721_v7 = vpop.f32.mrb[36].mxu0  ;;  %v2740_v8 = vsel %vm2733_vm9, %v2731_v5, -inf  ;;  %v3343_v6 = vld [vmem:[%s5355_s13] sm:$0xff] }
 0x886   : > { %v2732_v37 = vsel %vm5024_vm8, %v2721_v7, -3.4028235e+38  ;;  %2741 = vmax.xlane.f32.xlu1 %v2740_v8  ;;  %v4039_v11 = vpop.f32.mrb[35].mxu1  ;;  %v4044_v39 = vpop.f32.mrb[37].mxu0  ;;  %v3346_v60 = vld [vmem:[%s5355_s13 + $0x18] sm:$0xff]  ;;  %v3345_v7 = vld [vmem:[%s5355_s13 + $0x10] sm:$0xff] }
 0x887   : > { %v2724_v12 = vpop.f32.mrb[38].mxu0  ;;  %v2743_v38 = vsel %vm2733_vm9, %v2732_v37, -inf }
 0x888   : > { %2744 = vmax.xlane.f32.xlu0 %v2743_v38  ;;  %v4045_v40 = vpop.f32.mrb[39].mxu0 }
 0x897   : > { %2352 = vperm.xlu1 %4207, %v2346_v13  }
 0x90b   : > { %v2736_v27 = vpop.xlane.xlu1 %2735 }
 0x90c   : > { %v2746_v2 = vsub.f32 %v2729_v61, %v2736_v27  ;;  %v3077_v61 = vld [vmem:[%s5374_s8 + $0x18] sm:$0xff]  ;;  %s5379_s8 = sld [smem:[#allocation33_spill]] }
 0x90d   : > { %v2739_v14 = vpop.xlane.xlu0 %2738 }
 0x90e   : > { %v2750_v62 = vmul.f32 1.442695, %v2746_v2  ;;  %v2747_v16 = vsub.f32 %v2730_v15, %v2739_v14  ;;  %v3182_v15 = vld [vmem:[%s5376_s12] sm:$0xff]  ;;  %s5170_s12 = sand.u32 1, %s5381_s9  }
 0x910   : > { %4252 = vpow2.f32 %v2750_v62  ;;  %v2752_v32 = vmul.f32 1.442695, %v2747_v16 }
 0x912   : > { %4254 = vpow2.f32 %v2752_v32 }
 0x913   : > { %v2742_v18 = vpop.xlane.xlu1 %2741 }
 0x914   : > { %v2748_v19 = vsub.f32 %v2731_v5, %v2742_v18  ;;  %v3344_v5 = vld [vmem:[%s5355_s13 + $0x8] sm:$0xff]  ;;  %s5320_s13 = sshll.u32 %s4426_s18, 8 }
 0x915   : > { %v2745_v20 = vpop.xlane.xlu0 %2744  ;;  %s5176_s14 = scalar_lea.hbm %s5351_s16, %s5320_s13 }
 0x916   : > { %v2754_v21 = vmul.f32 1.442695, %v2748_v19  ;;  %v2749_v22 = vsub.f32 %v2732_v37, %v2745_v20 }
 0x917   : > { %v2353_v8 = vpop.permute.xlu1 %2352 }
 0x918   : > { %4256 = vpow2.f32 %v2754_v21  ;;  %v2756_v23 = vmul.f32 1.442695, %v2749_v22  ;;  %v2421_v16 = vadd.f32 %v4998_v29, %v2353_v8 }
 0x91a   : > { %v5041_v26 = vpop.eup %4252  ;;  %4258 = vpow2.f32 %v2756_v23  ;;  %v3836_v29 = vpack.c.bf16 %v2421_v16, %v2421_v16 }
 0x91b   : > { %v2758_v30 = vsel %vm2733_vm9, %v5041_v26, 0.0 }
 0x91c   : > { %v5045_v31 = vpop.eup %4254  ;;  %2759 = vadd.xlane.f32.xlu1 %v2758_v30 }
 0x91d   : > { %v2761_v33 = vsel %vm2733_vm9, %v5045_v31, 0.0 }
 0x91e   : > { %2762 = vadd.xlane.f32.xlu0 %v2761_v33 }
 0x922   : > { %v5049_v34 = vpop.eup %4256 }
 0x923   : > { %v2764_v35 = vsel %vm2733_vm9, %v5049_v34, 0.0 }
 0x924   : > { %v5053_v36 = vpop.eup %4258  ;;  %2765 = vadd.xlane.f32.xlu1 %v2764_v35 }
 0x925   : > { %v2767_v41 = vsel %vm2733_vm9, %v5053_v36, 0.0 }
 0x926   : > { %2768 = vadd.xlane.f32.xlu0 %v2767_v41 }
 0x935   : > { %2362 = vperm.xlu1 %4207, %v2348_v43  }
 0x939   : > { %2367 = vperm.xlu1 %4207, %v2349_v44  }
 0x93c   : > { %2357 = vperm.xlu0 %4206, %v2347_v45   ;;  %v4224_v45 = vld [vmem:[%s5378_s2] sm:$0xff]  }
 0x93d   : > { %2992 = vperm.xlu1 %4207, %v2982_v46  }
 0x940   : > { %2987 = vperm.xlu0 %4206, %v2981_v47  }
 0x941   : > { %3002 = vperm.xlu1 %4207, %v2984_v48  }
 0x944   : > { %2997 = vperm.xlu0 %4206, %v2983_v58  }
 0x945   : > { %3131 = vperm.xlu1 %4207, %v3075_v10  }
 0x948   : > { %3126 = vperm.xlu0 %4206, %v3074_v50  }
 0x949   : > { %3155 = vperm.xlu1 %4207, %v3079_v52  }
 0x94c   : > { %3150 = vperm.xlu0 %4206, %v3078_v53  }
 0x94d   : > { %3141 = vperm.xlu1 %4207, %v3077_v61  }
 0x950   : > { %3136 = vperm.xlu0 %4206, %v3076_v57  }
 0x951   : > { %3165 = vperm.xlu1 %4207, %v3081_v9  }
 0x954   : > { %3160 = vperm.xlu0 %4206, %v3080_v59  }
 0x955   : > { %3197 = vperm.xlu1 %4207, %v3183_v0  }
 0x958   : > { %3192 = vperm.xlu0 %4206, %v3182_v15  }
 0x959   : > { %3207 = vperm.xlu1 %4207, %v3185_v63  }
 0x95c   : > { %3202 = vperm.xlu0 %4206, %v3184_v1   ;;  %v4225_v1 = vld [vmem:[%s5378_s2 + $0x8] sm:$0xff]   ;;  %s5380_s2 = sld [smem:[#allocation35_spill]] }
 0x95d   : > { %3217 = vperm.xlu1 %4207, %v3187_v17   ;;  %v4226_v17 = vld [vmem:[%s5379_s8] sm:$0xff]  }
 0x960   : > { %3212 = vperm.xlu0 %4206, %v3186_v24  }
 0x961   : > { %3227 = vperm.xlu1 %4207, %v3189_v3  }
 0x964   : > { %3222 = vperm.xlu0 %4206, %v3188_v4  }
 0x965   : > { %3354 = vperm.xlu1 %4207, %v3344_v5  }
 0x968   : > { %3349 = vperm.xlu0 %4206, %v3343_v6  }
 0x969   : > { %3364 = vperm.xlu1 %4207, %v3346_v60  }
 0x96c   : > { %3359 = vperm.xlu0 %4206, %v3345_v7  }
 0x9a9   : > { %v2760_v37 = vpop.xlane.xlu1 %2759 }
 0x9aa   : > { %4260 = vrcp.f32 %v2760_v37 }
 0x9ab   : > { %v2763_v11 = vpop.xlane.xlu0 %2762 }
 0x9ac   : > { %4262 = vrcp.f32 %v2763_v11 }
 0x9b1   : > { %v2766_v39 = vpop.xlane.xlu1 %2765 }
 0x9b2   : > { %4264 = vrcp.f32 %v2766_v39 }
 0x9b3   : > { %v2769_v12 = vpop.xlane.xlu0 %2768 }
 0x9b4   : > { %v4261_v38 = vpop.eup %4260  ;;  %4266 = vrcp.f32 %v2769_v12 }
 0x9b5   : > { %v2778_v40 = vmul.f32 %v4261_v38, %v5041_v26  ;;  %v2363_v20 = vpop.permute.xlu1 %2362 }
 0x9b6   : > { %v4263_v13 = vpop.eup %4262 }
 0x9b7   : > { %v2782_v27 = vpack.c.bf16 %v2778_v40, %v2778_v40  ;;  %v2779_v2 = vmul.f32 %v4263_v13, %v5045_v31 }
 0x9b9   : > { %v2795_v14 = vsel %vm2733_vm9, %v2782_v27, 0  ;;  %v2783_v62 = vpack.c.bf16 %v2779_v2, %v2779_v2  ;;  %2787 = vst.msk [vmem:[%s5089_s7] sm:$0xf] %vm2786_vm10, %v2782_v27 }
 0x9ba   : > { %4047 = vmatpush3.bf16.xpose.msra.mxu1 %v2795_v14 }
 0x9bb   : > { %v2358_v32 = vpop.permute.xlu0 %2357  ;;  %v2841_v18 = vsel %vm2733_vm9, %v2783_v62, 0  ;;  %4058 = vmatprep.subr.bf16.mxu1 %v4471_v25  ;;  %2788 = vst.msk [vmem:[%s5089_s7 + $0x4] sm:$0xf] %vm2786_vm10, %v2783_v62 }
 0x9bc   : > { %v4265_v19 = vpop.eup %4264  ;;  %4053 = vmatpush3.bf16.xpose.msra.mxu0 %v2841_v18  ;;  %v2424_v21 = vadd.f32 %v5002_v42, %v2358_v32  ;;  %v2368_v42 = vpop.permute.xlu1 %2367 }
 0x9bd   : > { %v2780_v22 = vmul.f32 %v4265_v19, %v5049_v34  ;;  %4064 = vmatprep.subr.bf16.mxu0 %v4471_v25  ;;  %v2429_v34 = vadd.f32 %v4996_v28, %v2363_v20  ;;  %v2432_v41 = vadd.f32 %v5000_v49, %v2368_v42 }
 0x9be   : > { %v4267_v23 = vpop.eup %4266  ;;  %v3837_v31 = vpack.c.bf16 %v2424_v21, %v2424_v21 }
 0x9bf   : > { %v2784_v26 = vpack.c.bf16 %v2780_v22, %v2780_v22  ;;  %v2781_v30 = vmul.f32 %v4267_v23, %v5053_v36  ;;  %v3838_v43 = vpack.c.bf16 %v2429_v34, %v2429_v34  ;;  %v3839_v44 = vpack.c.bf16 %v2432_v41, %v2432_v41  ;;  %v2988_v24 = vpop.permute.xlu0 %2987 }
 0x9c0   : > { %v2993_v3 = vpop.permute.xlu1 %2992 }
 0x9c1   : > { %4049 = vmatmul.mubr.msk.bf16.vlgmr.msra.gmra.mrb[36].mxu1 %vm2733_vm9, %v3836_v29  ;;  %v2887_v33 = vsel %vm2733_vm9, %v2784_v26, 0  ;;  %v2785_v35 = vpack.c.bf16 %v2781_v30, %v2781_v30  ;;  %2789 = vst.msk [vmem:[%s5089_s7 + $0x8] sm:$0xf] %vm2786_vm10, %v2784_v26 }
 0x9c2   : > { %4059 = vmatpush3.bf16.xpose.msra.mxu1 %v2887_v33  ;;  %4060 = vmatprep.mubr.msk.bf16.mxu1 %vm4472_vm2, %v4471_v25 }
 0x9c3   : > { %4055 = vmatmul.mubr.msk.bf16.vlgmr.msra.gmra.mrb[40].mxu0 %vm2733_vm9, %v3837_v31  ;;  %v2933_v36 = vsel %vm2733_vm9, %v2785_v35, 0  ;;  %2790 = vst.msk [vmem:[%s5089_s7 + $0xc] sm:$0xf] %vm2786_vm10, %v2785_v35  ;;  %v2998_v5 = vpop.permute.xlu0 %2997 }
 0x9c4   : > { %4065 = vmatpush3.bf16.xpose.msra.mxu0 %v2933_v36  ;;  %4066 = vmatprep.mubr.msk.bf16.mxu0 %vm4472_vm2, %v4471_v25  ;;  %v3003_v37 = vpop.permute.xlu1 %3002 }
 0x9c9   : > { %4061 = vmatmul.mubr.msk.bf16.vlgmr.msra.gmra.mrb[40].mxu1 %vm2733_vm9, %v3838_v43 }
 0x9ca   : > { %4074 = vmatprep.mubr.msk.bf16.mxu1 %vm1163_vm1, %v4224_v45 }
 0x9cb   : > { %4067 = vmatmul.mubr.msk.bf16.vlgmr.msra.gmra.mrb[44].mxu0 %vm2733_vm9, %v3839_v44 }
 0x9cc   : > { %4082 = vmatprep.mubr.msk.bf16.mxu0 %vm1163_vm1, %v4226_v17 }
 0xa94   : > { %v2831_v28 = vpop.f32.mrb[36].mxu1 }
 0xa95   : > { %v4050_v46 = vpop.f32.mrb[37].mxu1 }
 0xa96   : > { %v2834_v47 = vpop.f32.mrb[38].mxu1  ;;  %v2877_v48 = vpop.f32.mrb[40].mxu0 }
 0xa97   : > { %v2979_v58 = vpack.c.bf16 %v2877_v48, %v2831_v28  ;;  %v4051_v10 = vpop.f32.mrb[39].mxu1  ;;  %v4056_v50 = vpop.f32.mrb[41].mxu0 }
 0xa98   : > { %v2880_v25 = vpop.f32.mrb[42].mxu0 }
 0xa99   : > { %v4057_v52 = vpop.f32.mrb[43].mxu0  ;;  %4070 = vmatprep.subr.bf16.mxu1 %v2979_v58  ;;  %v3132_v25 = vpop.permute.xlu1 %3131 }
 0xa9a   : > { %4071 = vmatpush3.bf16.msra.mxu1 %v2979_v58  ;;  %v3127_v52 = vpop.permute.xlu0 %3126 }
 0xa9c   : > { %v2923_v49 = vpop.f32.mrb[40].mxu1 }
 0xa9d   : > { %v4062_v53 = vpop.f32.mrb[41].mxu1 }
 0xa9e   : > { %v2926_v61 = vpop.f32.mrb[42].mxu1  ;;  %v2969_v57 = vpop.f32.mrb[44].mxu0 }
 0xa9f   : > { %v2980_v9 = vpack.c.bf16 %v2969_v57, %v2923_v49  ;;  %v4063_v59 = vpop.f32.mrb[43].mxu1  ;;  %v4068_v0 = vpop.f32.mrb[45].mxu0 }
 0xaa0   : > { %v2972_v15 = vpop.f32.mrb[46].mxu0  ;;  %v3156_v61 = vpop.permute.xlu1 %3155 }
 0xaa1   : > { %v4069_v63 = vpop.f32.mrb[47].mxu0  ;;  %4072 = vmatprep.subr.bf16.mxu1 %v2980_v9  ;;  %v3151_v57 = vpop.permute.xlu0 %3150 }
 0xaa2   : > { %4073 = vmatpush3.bf16.msra.mxu1 %v2980_v9 }
 0xaa4   : > { %v3142_v9 = vpop.permute.xlu1 %3141 }
 0xaa5   : > { %4075 = vmatmul.mubr.msk.bf16.vlgmr.msra.gmra.mrb[44].mxu1 %vm1163_vm1, %v4225_v1  ;;  %v3137_v59 = vpop.permute.xlu0 %3136 }
 0xb78   : > { %v4076_v4 = vpop.f32.mrb[44].mxu1 }
 0xb79   : > { %v3055_v6 = vpop.f32.mrb[45].mxu1  ;;  %v3064_v60 = vadd.f32 %v4076_v4, %v2998_v5 }
 0xb7a   : > { %v3056_v7 = vadd.f32 %v3055_v6, %v2988_v24  ;;  %v4077_v8 = vpop.f32.mrb[46].mxu1  ;;  %v3166_v6 = vpop.permute.xlu1 %3165 }
 0xb7b   : > { %v3058_v11 = vpop.f32.mrb[47].mxu1  ;;  %v3067_v12 = vadd.f32 %v4077_v8, %v3003_v37  ;;  %v5128_v40 = vadd.f32 %v3064_v60, %v4942_v54  ;;  %v3161_v60 = vpop.permute.xlu0 %3160 }
 0xb7c   : > { %v5125_v39 = vadd.f32 %v3056_v7, %v4939_v51  ;;  %v3059_v38 = vadd.f32 %v3058_v11, %v2993_v3 }
 0xb7d   : > { %v5136_v2 = vadd.f32 %v3067_v12, %v4950_v56  ;;  %v3085_v51 = vsel %vm1031_vm0, %v5128_v40, 0.0 }
 0xb7e   : > { %v5131_v13 = vadd.f32 %v3059_v38, %v4945_v55  ;;  %v3082_v27 = vsel %vm1031_vm0, %v5125_v39, 0.0 }
 0xb7f   : > { %v3087_v54 = vsel %vm1031_vm0, %v5136_v2, 0.0 }
 0xb80   : > { %v3083_v14 = vsel %vm1031_vm0, %v5131_v13, 0.0 }
 0xb81   : > { %v3084_v62 = vadd.f32 %v3083_v14, %v3082_v27  ;;  %v4227_v27 = vld [vmem:[%s5379_s8 + $0x8] sm:$0xff]   ;;  %v4228_v14 = vld [vmem:[%s5379_s8 + $0x10] sm:$0xff]  }
 0xb83   : > { %v3086_v16 = vadd.f32 %v3085_v51, %v3084_v62  ;;  %v4229_v62 = vld [vmem:[%s5379_s8 + $0x18] sm:$0xff]   ;;  %v4230_v51 = vld [vmem:[%s5380_s2] sm:$0xff]   ;;  %s4473_s8 = smov [#allocation7]  }
 0xb84   : > { %4098 = vmatprep.mubr.msk.bf16.mxu1 %vm3377_vm11, %v4230_v51  ;;  %s4298_s9 = sshll.u32 %s4473_s8, 4  ;;  %s4299_s9 = int_to_ptr.vmem [resolvable:$false] %s4298_s9 }
 0xb85   : > { %v3088_v32 = vadd.f32 %v3087_v54, %v3086_v16  ;;  %v3193_v16 = vpop.permute.xlu0 %3192  ;;  %v3198_v54 = vpop.permute.xlu1 %3197  ;;  %s4300_s19 = scalar_lea.vmem %s4299_s9, 512 }
 0xb87   : > { %v3089_v55 = vrot.slane %v3088_v32, 4 }
 0xb89   : > { %v3090_v18 = vadd.f32 %v3089_v55, %v3088_v32  ;;  %v3203_v32 = vpop.permute.xlu0 %3202  ;;  %v3208_v55 = vpop.permute.xlu1 %3207 }
 0xb8b   : > { %v3091_v19 = vrot.slane %v3090_v18, 2 }
 0xb8d   : > { %v3092_v20 = vadd.f32 %v3091_v19, %v3090_v18 }
 0xb8f   : > { %v3093_v21 = vrot.slane %v3092_v20, 1 }
 0xb91   : > { %v3094_v22 = vadd.f32 %v3093_v21, %v3092_v20  ;;  %v3213_v21 = vpop.permute.xlu0 %3212 }
 0xb93   : > { %v3095_v56 = vmul.f32 0.03125, %v3094_v22 }
 0xb95   : > { %v3096_v23 = vsub.f32 %v5125_v39, %v3095_v56  ;;  %v3097_v29 = vsub.f32 %v5131_v13, %v3095_v56  ;;  %v3098_v26 = vsub.f32 %v5128_v40, %v3095_v56  ;;  %v3099_v30 = vsub.f32 %v5136_v2, %v3095_v56 }
 0xb97   : > { %v3100_v31 = vmul.f32 %v3096_v23, %v3096_v23  ;;  %v3101_v33 = vmul.f32 %v3097_v29, %v3097_v29  ;;  %v3102_v35 = vmul.f32 %v3098_v26, %v3098_v26  ;;  %v3103_v42 = vmul.f32 %v3099_v30, %v3099_v30 }
 0xb99   : > { %v3104_v34 = vsel %vm1031_vm0, %v3100_v31, 0.0  ;;  %v3105_v36 = vsel %vm1031_vm0, %v3101_v33, 0.0  ;;  %v3107_v43 = vsel %vm1031_vm0, %v3102_v35, 0.0  ;;  %v3109_v45 = vsel %vm1031_vm0, %v3103_v42, 0.0 }
 0xb9a   : > { %v3106_v41 = vadd.f32 %v3105_v36, %v3104_v34  ;;  %v3223_v36 = vpop.permute.xlu0 %3222 }
 0xb9c   : > { %v3108_v44 = vadd.f32 %v3107_v43, %v3106_v41 }
 0xb9e   : > { %v3110_v28 = vadd.f32 %v3109_v45, %v3108_v44 }
 0xba0   : > { %v3111_v46 = vrot.slane %v3110_v28, 4 }
 0xba2   : > { %v3112_v47 = vadd.f32 %v3111_v46, %v3110_v28 }
 0xba4   : > { %v3113_v48 = vrot.slane %v3112_v47, 2 }
 0xba6   : > { %v3114_v58 = vadd.f32 %v3113_v48, %v3112_v47 }
 0xba8   : > { %v3115_v10 = vrot.slane %v3114_v58, 1 }
 0xbaa   : > { %v3116_v50 = vadd.f32 %v3115_v10, %v3114_v58 }
 0xbac   : > { %v3117_v49 = vmul.f32 0.03125, %v3116_v50 }
 0xbae   : > { %v3118_v53 = vadd.f32 1e-12, %v3117_v49 }
 0xbb0   : > { %4268 = vrsqrt.f32 %v3118_v53 }
 0xbba   : > { %v4269_v0 = vpop.eup %4268 }
 0xbbb   : > { %v3121_v15 = vmul.f32 %v4269_v0, %v3097_v29  ;;  %v3120_v63 = vmul.f32 %v4269_v0, %v3096_v23  ;;  %v3122_v1 = vmul.f32 %v4269_v0, %v3098_v26  ;;  %v3123_v17 = vmul.f32 %v4269_v0, %v3099_v30  ;;  %v3218_v26 = vpop.permute.xlu1 %3217 }
 0xbbd   : > { %v3144_v24 = vmul.f32 %v3127_v52, %v3120_v63  ;;  %v3145_v3 = vmul.f32 %v3132_v25, %v3121_v15  ;;  %v3146_v4 = vmul.f32 %v3137_v59, %v3122_v1  ;;  %v3147_v5 = vmul.f32 %v3142_v9, %v3123_v17  ;;  %v3350_v59 = vpop.permute.xlu0 %3349 }
 0xbbf   : > { %v3168_v7 = vadd.f32 %v3151_v57, %v3144_v24  ;;  %v3169_v8 = vadd.f32 %v3156_v61, %v3145_v3  ;;  %v3170_v37 = vadd.f32 %v3161_v60, %v3146_v4  ;;  %v3171_v11 = vadd.f32 %v3166_v6, %v3147_v5  ;;  %v3228_v28 = vpop.permute.xlu1 %3227  ;;  %v4231_v57 = vld [vmem:[%s5380_s2 + $0x8] sm:$0xff]   ;;  %s3509_s2 = sshll.u32 %s4874_s6, 4  ;;  %s3476_s6 = scalar_lea.sflag [#allocation8], %s5170_s12  ;;  %s5164_s2 = int_to_ptr.vmem [resolvable:$true] %s3509_s2 }
 0xbc0   : > { %s4294_s17 = scalar_lea.vmem %s5164_s2, 256  ;;  %p4301_p11 = scmp.lt.s32.totalorder %s5164_s2, %s4299_s9 }
 0xbc1   : > { %v3180_v12 = vpack.c.bf16 %v3169_v8, %v3168_v7  ;;  %v3181_v38 = vpack.c.bf16 %v3171_v11, %v3170_v37  ;;  %v3360_v4 = vpop.permute.xlu0 %3359  ;;  %p4295_p8 = scmp.ne.s32.totalorder %s5164_s2, %s4294_s17  ;;  %p4302_p12 = scmp.lt.s32.totalorder %s4300_s19, %s4294_s17 }
 0xbc3   : > { %4078 = vmatprep.subr.bf16.mxu0 %v3180_v12  ;;  %v3355_v1 = vpop.permute.xlu1 %3354  ;;  %p4296_p9 = pnand %p4295_p8, %p4689_p0  ;;  %p4303_p13 = por %p4302_p12, %p4301_p11 }
 0xbc4   : > { %4079 = vmatpush3.bf16.msra.mxu0 %v3180_v12 }
 0xbc5   : > { %4080 = vmatprep.subr.bf16.mxu0 %v3181_v38  ;;  %p4297_p10 = pneg %p4296_p9 }
 0xbc7   : > { %p4304_p1 = pnand %p4303_p13, %p4297_p10 }
 0xbc8   : > { %4081 = vmatpush3.bf16.msra.mxu0 %v3181_v38 }
 0xbcb   : > { %4083 = vmatmul.mubr.msk.bf16.vlgmr.msra.gmra.mrb[48].mxu0 %vm1163_vm1, %v4227_v27 }
 0xbcc   : > { %4086 = vmatprep.mubr.msk.bf16.mxu0 %vm1163_vm1, %v4228_v14 }
 0xbd3   : > { %4087 = vmatmul.mubr.msk.bf16.gmra.mrb[52].mxu0 %vm1163_vm1, %v4229_v62 }
 0xc9e   : > { %v4084_v18 = vpop.f32.mrb[48].mxu0 }
 0xc9f   : > { %v3305_v19 = vadd.f32 %v4084_v18, %v3203_v32  ;;  %v3296_v20 = vpop.f32.mrb[49].mxu0 }
 0xca0   : > { %v3297_v22 = vadd.f32 %v3296_v20, %v3193_v16  ;;  %v4085_v56 = vpop.f32.mrb[50].mxu0 }
 0xca1   : > { %v3308_v23 = vadd.f32 %v4085_v56, %v3208_v55  ;;  %v3299_v29 = vpop.f32.mrb[51].mxu0  ;;  %v3329_v31 = vmax.f32 %v3305_v19, 0.0 }
 0xca2   : > { %v3300_v30 = vadd.f32 %v3299_v29, %v3198_v54  ;;  %v3327_v35 = vmax.f32 %v3297_v22, 0.0 }
 0xca3   : > { %v3330_v33 = vmax.f32 %v3308_v23, 0.0 }
 0xca4   : > { %v3328_v42 = vmax.f32 %v3300_v30, 0.0 }
 0xca5   : > { %v3340_v34 = vpack.c.bf16 %v3330_v33, %v3329_v31 }
 0xca6   : > { %v3339_v41 = vpack.c.bf16 %v3328_v42, %v3327_v35  ;;  %v4088_v43 = vpop.f32.mrb[52].mxu0 }
 0xca7   : > { %v3321_v44 = vadd.f32 %v4088_v43, %v3223_v36  ;;  %v3312_v45 = vpop.f32.mrb[53].mxu0 }
 0xca8   : > { %v3313_v46 = vadd.f32 %v3312_v45, %v3213_v21  ;;  %v4089_v47 = vpop.f32.mrb[54].mxu0  ;;  %4090 = vmatprep.subr.bf16.mxu1 %v3339_v41 }
 0xca9   : > { %v3324_v48 = vadd.f32 %v4089_v47, %v3228_v28  ;;  %v3315_v58 = vpop.f32.mrb[55].mxu0  ;;  %4091 = vmatpush3.bf16.msra.mxu1 %v3339_v41  ;;  %v3333_v50 = vmax.f32 %v3321_v44, 0.0 }
 0xcaa   : > { %v3316_v10 = vadd.f32 %v3315_v58, %v3218_v26  ;;  %4092 = vmatprep.subr.bf16.mxu1 %v3340_v34  ;;  %v3331_v52 = vmax.f32 %v3313_v46, 0.0 }
 0xcab   : > { %v3334_v25 = vmax.f32 %v3324_v48, 0.0 }
 0xcac   : > { %v3332_v49 = vmax.f32 %v3316_v10, 0.0 }
 0xcad   : > { %v3342_v53 = vpack.c.bf16 %v3334_v25, %v3333_v50  ;;  %4093 = vmatpush3.bf16.msra.mxu1 %v3340_v34 }
 0xcae   : > { %v3341_v61 = vpack.c.bf16 %v3332_v49, %v3331_v52 }
 0xcb0   : > { %4094 = vmatprep.subr.bf16.mxu1 %v3341_v61 }
 0xcb1   : > { %4095 = vmatpush3.bf16.msra.mxu1 %v3341_v61 }
 0xcb2   : > { %4096 = vmatprep.subr.bf16.mxu1 %v3342_v53 }
 0xcb5   : > { %4097 = vmatpush3.bf16.msra.mxu1 %v3342_v53 }
 0xcb8   : > { %4099 = vmatmul.mubr.msk.bf16.vlgmr.msra.gmra.mrb[48].mxu1 %vm3377_vm11, %v4231_v57 }
 0xd8b   : > { %v4100_v9 = vpop.f32.mrb[48].mxu1 }
 0xd8c   : > { %v3418_v0 = vpop.f32.mrb[49].mxu1  ;;  %v3427_v5 = vadd.f32 %v4100_v9, %v3360_v4 }
 0xd8d   : > { %v3419_v15 = vadd.f32 %v3418_v0, %v3350_v59  ;;  %v4101_v63 = vpop.f32.mrb[50].mxu1 }
 0xd8e   : > { %v3421_v17 = vpop.f32.mrb[51].mxu1  ;;  %v3435_v60 = vadd.f32 %v3427_v5, %v5128_v40 }
 0xd8f   : > { %v3433_v24 = vadd.f32 %v3419_v15, %v5125_v39  ;;  %v3422_v3 = vadd.f32 %v3421_v17, %v3355_v1  ;;  %v3365_v39 = vpop.permute.xlu1 %3364 }
 0xd90   : > { %v3430_v7 = vadd.f32 %v4101_v63, %v3365_v39 }
 0xd91   : > { %3437 = vxpose.xlu0.b32.start [1/4] (short) (narrow) %v3433_v24, 8  ;;  %v3434_v6 = vadd.f32 %v3422_v3, %v5131_v13 }
 0xd95   : > { %3438 = vxpose.xlu0.b32.cont [2/4] (short) (narrow) %v3434_v6, 8 }
 0xd96   : > { %4307 = shalt.err (!%p4304_p1)
}
 0xd97   : > { %s4308_s13 = scalar_lea.hbm %s5176_s14, 256  ;;  %s4312_s8 = scalar_lea.hbm %s5351_s16, 512 }
 0xd98   : > { %p4309_p2 = scmp.ne.s32.totalorder %s5176_s14, %s4308_s13  ;;  %p4313_p6 = scmp.lt.u32.totalorder %s5176_s14, %s5351_s16 }
 0xd99   : > { %p4314_p7 = scmp.lt.u32.totalorder %s4312_s8, %s4308_s13  ;;  %p4316_p9 = scmp.lt.u32.totalorder %s4308_s13, %s5176_s14 }
 0xd9a   : > { %p4310_p3 = pnand %p4309_p2, %p4689_p0 }
 0xd9b   : > { %p4315_p8 = por %p4314_p7, %p4313_p6 }
 0xd9c   : > { %p4311_p5 = pneg %p4310_p3 }
 0xd9d   : > { %p4317_p11 = por %p4316_p9, %p4315_p8 }
 0xd9f   : > { %p4318_p10 = pnand %p4317_p11, %p4311_p5 }
 0xda1   : > { %4321 = shalt.err (!%p4318_p10)
}
 0xda2   : > { %s4474_s17 = smov 64   ;;  %s4475_s19 = smov 4   ;;  %3439 = vxpose.xlu0.b32.cont [3/4] (short) (narrow) %v3435_v60, 8  ;;  %v3436_v40 = vadd.f32 %v3430_v7, %v5136_v2 }
 0xda3   : > { %4103 = dma.vmem_to_hbm [thread:$0]  (%p4689_p0), %s5164_s2, 256, %s5176_s14, %s3476_s6, %s4474_s17, %s4474_s17, %s4475_s19  }
 0xda4   : > { %s5382_s13 = sshll.u32 %s5089_s7, 4  ;;  %s5383_s9 = sshll.u32 %s4426_s18, 8  ;;  %s5204_s13 = int_to_ptr.vmem [resolvable:$true] %s5382_s13 }
 0xda5   : > { %s5209_s8 = scalar_lea.hbm %s4641_s23, %s5383_s9  ;;  %s4322_s16 = scalar_lea.vmem %s5204_s13, 256 }
 0xda6   : > { %p4323_p12 = scmp.ne.s32.totalorder %s5204_s13, %s4322_s16  ;;  %s4476_s21 = smov [#allocation9]  }
 0xda7   : > { %s4326_s24 = sshll.u32 %s4476_s21, 4  ;;  %s4327_s24 = int_to_ptr.vmem [resolvable:$false] %s4326_s24 }
 0xda8   : > { %p4324_p13 = pnand %p4323_p12, %p4689_p0  ;;  %s4328_s14 = scalar_lea.vmem %s4327_s24, 512 }
 0xda9   : > { %p4329_p2 = scmp.lt.s32.totalorder %s5204_s13, %s4327_s24  ;;  %p4330_p3 = scmp.lt.s32.totalorder %s4328_s14, %s4322_s16 }
 0xdaa   : > { %p4325_p1 = pneg %p4324_p13 }
 0xdab   : > { %p4331_p5 = por %p4330_p3, %p4329_p2 }
 0xdad   : > { %p4332_p6 = pnand %p4331_p5, %p4325_p1 }
 0xdaf   : > { %4335 = shalt.err (!%p4332_p6)
}
 0xdb0   : > { %s4336_s7 = scalar_lea.hbm %s5209_s8, 256  ;;  %s4340_s21 = scalar_lea.hbm %s4641_s23, 512 }
 0xdb1   : > { %p4337_p7 = scmp.ne.s32.totalorder %s5209_s8, %s4336_s7  ;;  %p4341_p11 = scmp.lt.u32.totalorder %s5209_s8, %s4641_s23 }
 0xdb2   : > { %p4342_p10 = scmp.lt.u32.totalorder %s4340_s21, %s4336_s7  ;;  %p4344_p13 = scmp.lt.u32.totalorder %s4336_s7, %s5209_s8 }
 0xdb3   : > { %p4338_p8 = pnand %p4337_p7, %p4689_p0 }
 0xdb4   : > { %p4343_p12 = por %p4342_p10, %p4341_p11 }
 0xdb5   : > { %p4339_p9 = pneg %p4338_p8 }
 0xdb6   : > { %p4345_p2 = por %p4344_p13, %p4343_p12 }
 0xdb8   : > { %p4346_p1 = pnand %p4345_p2, %p4339_p9 }
 0xdba   : > { %4349 = shalt.err (!%p4346_p1)
}
 0xdbb   : > { %4104 = dma.vmem_to_hbm [thread:$0]  (%p4689_p0), %s5204_s13, 256, %s5209_s8, %s3476_s6, %s4474_s17, %s4474_s17, %s4475_s19   ;;  %3440 = vxpose.xlu0.b32.end [4/4] (short) (narrow) %v3436_v40, 8 }
 0xdbc   : > { %s3711_s24 = sshll.u32 %s4866_s4, 3  ;;  %s3807_s16 = sshll.u32 %s4426_s18, 7 }
 0xdbd   : > { %s974_s2 = scalar_lea.vmem [#allocation5], %s3711_s24  ;;  %s5237_s14 = scalar_lea.hbm %s4631_s10, %s3807_s16 }
 0xdbe   : > { %s3495_s9 = sshll.u32 %s974_s2, 4  ;;  %s3471_s12 = scalar_lea.sflag [#allocation6], %s4866_s4  ;;  %s5239_s9 = int_to_ptr.vmem [resolvable:$true] %s3495_s9 }
 0xdbf   : > { %s4350_s7 = scalar_lea.vmem %s5239_s9, 128  ;;  %s4477_s6 = smov [#allocation5]  }
 0xdc0   : > { %p4351_p3 = scmp.ne.s32.totalorder %s5239_s9, %s4350_s7  ;;  %s4354_s18 = sshll.u32 %s4477_s6, 4  ;;  %s4355_s18 = int_to_ptr.vmem [resolvable:$false] %s4354_s18 }
 0xdc1   : > { %s4356_s17 = scalar_lea.vmem %s4355_s18, 256  ;;  %p4357_p7 = scmp.lt.s32.totalorder %s5239_s9, %s4355_s18 }
 0xdc2   : > { %p4352_p5 = pnand %p4351_p3, %p4689_p0  ;;  %p4358_p8 = scmp.lt.s32.totalorder %s4356_s17, %s4350_s7 }
 0xdc4   : > { %p4353_p6 = pneg %p4352_p5  ;;  %p4359_p9 = por %p4358_p8, %p4357_p7 }
 0xdc6   : > { %p4360_p11 = pnand %p4359_p9, %p4353_p6 }
 0xe2f   : > { %v3453_v13 = vpop.trf.xlu0 }
 0xe30   : > { %3469 = vst.msk [vmem:[%s974_s2] sm:$0xff] %vm1163_vm1, %v3453_v13 }
 0xe31   : > { %4363 = shalt.err (!%p4360_p11)
}
 0xe32   : > { %s4364_s4 = scalar_lea.hbm %s5237_s14, 128  ;;  %s4368_s19 = scalar_lea.hbm %s4631_s10, 256 }
 0xe33   : > { %p4365_p10 = scmp.ne.s32.totalorder %s5237_s14, %s4364_s4  ;;  %p4369_p2 = scmp.lt.u32.totalorder %s5237_s14, %s4631_s10 }
 0xe34   : > { %p4370_p1 = scmp.lt.u32.totalorder %s4368_s19, %s4364_s4  ;;  %p4372_p5 = scmp.lt.u32.totalorder %s4364_s4, %s5237_s14 }
 0xe35   : > { %p4366_p12 = pnand %p4365_p10, %p4689_p0 }
 0xe36   : > { %p4371_p3 = por %p4370_p1, %p4369_p2 }
 0xe37   : > { %p4367_p13 = pneg %p4366_p12 }
 0xe38   : > { %p4373_p7 = por %p4372_p5, %p4371_p3 }
 0xe3a   : > { %p4374_p6 = pnand %p4373_p7, %p4367_p13 }
 0xe3c   : > { %4377 = shalt.err (!%p4374_p6)
}
 0xe3d   : > { %4102 = dma.vmem_to_hbm [thread:$0]  (%p4689_p0), %s5239_s9, 128, %s5237_s14, %s3471_s12  }
 0xe3e PF: > { %p4118_p8 = scmp.ge.s32.totalorder %s4434_s22, 2  ;;  %s3541_s13 = sand.u32 1, %s4414_s3  }
 0xe3f   : > { %s3542_s8 = scalar_lea.sflag [#allocation6], %s3541_s13 }
 0xe40   : > { %p4109_p9 = pnand %p4118_p8, %p4698_p4 }
 0xe42   : > { %4405 = dma.done.wait (!%p4109_p9), %s3542_s8, 128  }
 0xe43   : > { %4407 = vsyncadd (!%p4109_p9), %s3542_s8, 4294967168  ;;  %s5384_s21 = sadd.s32 4294967294, %s4434_s22  }
 0xe44   : > { %s3550_s24 = sand.u32 1, %s5384_s21  }
 0xe45   : > { %s3551_s16 = scalar_lea.sflag [#allocation8], %s3550_s24 }
 0xe46   : > { %4409 = dma.done.wait (!%p4109_p9), %s3551_s16, 512  }
 0xe47   : > { %4411 = vsyncadd (!%p4109_p9), %s3551_s16, 4294966784  ;;  %s92_s22 = sadd.s32 1, %s4434_s22   ;;  %s5385_s3 = smov %s4418_s0 }
 0xe48   : > { %p89_p0 = scmp.ge.s32.totalorder %s92_s22, 4   ;;  %s5386_s0 = smov %s4422_s15 }
 0xe49   : > { %s5387_s15 = smov %s4704_s5  ;;  %s5388_s18 = smov %s4430_s1 }
 0xe4a   : > { %s5389_s1 = smov %s5391_s28  ;;  %91 = sbr.rel (!%p89_p0) target bundleno = 92 (0x5c), region = 234 }
 0xe51   :  { %3565 = vsyncpa [#allocation6], 1 }
 0xe52   :  { %3567 = vsyncpa [#allocation6 + $0x1], 1 }
 0xe53   :  { %3568 = vsyncpa [#allocation8], 1 }
 0xe54   :  { %3570 = vsyncpa [#allocation8 + $0x1], 1 }

</bundles_post_ra>
